<compile_context>
chip_gen: v7x
topology: tpu7x:2x2x1
jax: 0.10.0
libtpu: 0.0.40
codegen_flags: <defaults>
</compile_context>

<pallas_src>
import functools

import jax
import jax.numpy as jnp
from jax.experimental import pallas as pl
from jax.experimental.pallas import tpu as pltpu


def _unet_up_kernel(skip_ref, x_ref, wt_ref, bt_ref, w1_ref, b1_ref, w2_ref, b2_ref,
                    o_ref, cat_ref, h_ref, up_ref, *, strided_interleave):
    """Per-grid-step (one batch element) fused UNetUp forward.

    skip_ref: (1, Cskip, Lskip)  channels-first skip connection
    x_ref   : (1, Cin, L)        channels-first input to be upsampled (Lskip >= 2*L)
    wt_ref  : (Kt, Cin_in, Cin_out)  ConvTranspose taps
    bt_ref  : (Cin, 1)           ConvTranspose bias
    w1_ref  : (ks, Cout, C_total)    conv1 taps, BN scale already folded in
    b1_ref  : (Cout, 1)          conv1 folded BN shift (incl. conv bias)
    w2_ref  : (ks, Cout, Cout)   conv2 taps, BN scale folded in
    b2_ref  : (Cout, 1)
    o_ref   : (1, Cout, Lskip)   channels-first (lane-dense along Lskip) output
    cat_ref : (C_total, Lskip+2*pad) scratch, [skip ; padded upsample], zero halo
    h_ref   : (Cout,   Lskip+2*pad) scratch, conv1 output with zero halo
    up_ref  : (Lup, Cin)         channels-last staging buffer for the interleave
    """
    f32 = jnp.float32
    _, Cskip, Lskip = skip_ref.shape
    _, Cin, L = x_ref.shape
    Kt = wt_ref.shape[0]
    ks, Cout, C_total = w1_ref.shape
    pad = ks // 2
    pad_t = (ks - 1) // 2 - 1            # ConvTranspose1d padding (>= 0 for ks >= 3)
    Lup = 2 * L
    dl = (Lskip - Lup) // 2              # F.pad left amount (diff // 2)
    dr = Lskip - Lup - dl

    # ---- zero ONLY the halo / F.pad regions (interior is fully overwritten) ----
    cat_ref[:, :pad] = jnp.zeros((C_total, pad), f32)
    cat_ref[:, pad + Lskip:] = jnp.zeros((C_total, pad), f32)
    if dl > 0:
        cat_ref[Cskip:, pad:pad + dl] = jnp.zeros((Cin, dl), f32)
    if dr > 0:
        cat_ref[Cskip:, pad + dl + Lup:pad + Lskip] = jnp.zeros((Cin, dr), f32)
    h_ref[:, :pad] = jnp.zeros((Cout, pad), f32)
    h_ref[:, pad + Lskip:] = jnp.zeros((Cout, pad), f32)

    # ---- skip connection: already channels-first, copy straight into cat ----
    cat_ref[:Cskip, pad:pad + Lskip] = skip_ref[0]

    # ---- ConvTranspose1d(Cin->Cin, Kt, stride=2, padding=pad_t) ----
    # Parity decomposition: output column j = 2*m - pad_t + k.  One small
    # (L,Cin)@(Cin,Cin) matmul per tap, accumulated into the even / odd phase
    # with a static sublane shift; no O(L^2) selection masks.
    x_lc = x_ref[0].T                                           # (L, Cin) channels-last
    phases = [jnp.zeros((L, Cin), f32), jnp.zeros((L, Cin), f32)]
    for k in range(Kt):
        yk = jnp.dot(x_lc, wt_ref[k], preferred_element_type=f32)      # (L, Cin)
        t = k - pad_t
        p = t % 2                     # output parity hit by this tap
        d = (t - p) // 2              # shift of the phase index (floor division)
        if d == 0:
            contrib = yk
        elif d > 0:
            contrib = jnp.concatenate(
                [jnp.zeros((d, Cin), f32), yk[:L - d, :]], axis=0)
        else:
            contrib = jnp.concatenate(
                [yk[-d:, :], jnp.zeros((-d, Cin), f32)], axis=0)
        phases[p] = phases[p] + contrib

    if strided_interleave:
        # Interleave the two phases with two stride-2 sublane stores: O(L) work.
        up_ref[pl.ds(0, L, stride=2), :] = phases[0]
        up_ref[pl.ds(1, L, stride=2), :] = phases[1]
        up_lc = up_ref[...]                                     # (Lup, Cin)
    else:
        # Fallback: interleave via two 0/1 selection matmuls (proven lowering path).
        row = jax.lax.broadcasted_iota(jnp.int32, (Lup, L), 0)
        col = jax.lax.broadcasted_iota(jnp.int32, (Lup, L), 1)
        e_sel = (row == 2 * col).astype(f32)
        o_sel = (row == 2 * col + 1).astype(f32)
        up_lc = (jnp.dot(e_sel, phases[0], preferred_element_type=f32)
                 + jnp.dot(o_sel, phases[1], preferred_element_type=f32))

    up_cf = up_lc.T + bt_ref[...]                               # (Cin, Lup) + bias
    cat_ref[Cskip:, pad + dl:pad + dl + Lup] = up_cf

    # ---- Conv1d(C_total->Cout) + folded BN + ReLU: shifted-view matmul accumulation ----
    acc1 = jnp.zeros((Cout, Lskip), f32)
    for k in range(ks):
        acc1 = acc1 + jnp.dot(w1_ref[k], cat_ref[:, k:k + Lskip],
                              preferred_element_type=f32)
    h_ref[:, pad:pad + Lskip] = jnp.maximum(acc1 + b1_ref[...], 0.0)
    # TODO(synk): Dropout1d(p) is identity in eval mode; training-mode channel dropout
    # is not implemented.

    # ---- Conv1d(Cout->Cout) + folded BN + ReLU ----
    acc2 = jnp.zeros((Cout, Lskip), f32)
    for k in range(ks):
        acc2 = acc2 + jnp.dot(w2_ref[k], h_ref[:, k:k + Lskip],
                              preferred_element_type=f32)
    o_ref[0] = jnp.maximum(acc2 + b2_ref[...], 0.0).astype(o_ref.dtype)


def unet_up_pallas(x_skip, x, params, *, strided_interleave=True):
    """x_skip: (N, Cskip, Lskip), x: (N, Cin, L) float32 (PyTorch NCL layout).
    Returns (N, Cout, Lskip) float32 -- UNetUp.eval() forward."""
    (wt, bt, w1, cb1, g1, be1, rm1, rv1, w2, cb2, g2, be2, rm2, rv2) = params
    eps = 1e-5
    N, Cskip, Lskip = x_skip.shape
    Nx, Cin, L = x.shape
    assert Nx == N
    Cout, C_total, ks = w1.shape
    Kt = wt.shape[-1]
    assert C_total == Cskip + Cin and Kt == ks - 1
    assert ks >= 3 and ks % 2 == 1, "kernel assumes odd ks >= 3 (non-negative pad_t)"
    pad = ks // 2
    Lup = 2 * L
    diff = Lskip - Lup
    assert diff >= 0  # TODO(synk): negative diff (F.pad cropping) not handled.

    # Fold BatchNorm (eval mode, running stats) + conv bias into the conv weights /
    # a per-channel shift, so the kernel does only dot + bias + ReLU.
    s1 = g1 / jnp.sqrt(rv1 + eps)
    s2 = g2 / jnp.sqrt(rv2 + eps)
    b1 = (be1 + (cb1 - rm1) * s1).reshape(Cout, 1)
    b2 = (be2 + (cb2 - rm2) * s2).reshape(Cout, 1)

    wt_taps = jnp.transpose(wt, (2, 0, 1))                        # (Kt, Cin_in, Cin_out)
    w1_taps = jnp.transpose(w1 * s1[:, None, None], (2, 0, 1))    # (ks, Cout, C_total)
    w2_taps = jnp.transpose(w2 * s2[:, None, None], (2, 0, 1))    # (ks, Cout, Cout)
    bt_cf = bt.reshape(Cin, 1)

    kernel = functools.partial(_unet_up_kernel,
                               strided_interleave=strided_interleave)

    grid_spec = pltpu.PrefetchScalarGridSpec(
        num_scalar_prefetch=0,
        grid=(N,),
        in_specs=[
            pl.BlockSpec((1, Cskip, Lskip), lambda n: (n, 0, 0)),
            pl.BlockSpec((1, Cin, L), lambda n: (n, 0, 0)),
            # weights / biases: constant index maps -> stay VMEM-resident across steps
            pl.BlockSpec((Kt, Cin, Cin), lambda n: (0, 0, 0)),
            pl.BlockSpec((Cin, 1), lambda n: (0, 0)),
            pl.BlockSpec((ks, Cout, C_total), lambda n: (0, 0, 0)),
            pl.BlockSpec((Cout, 1), lambda n: (0, 0)),
            pl.BlockSpec((ks, Cout, Cout), lambda n: (0, 0, 0)),
            pl.BlockSpec((Cout, 1), lambda n: (0, 0)),
        ],
        out_specs=pl.BlockSpec((1, Cout, Lskip), lambda n: (n, 0, 0)),
        scratch_shapes=[
            pltpu.VMEM((C_total, Lskip + 2 * pad), jnp.float32),
            pltpu.VMEM((Cout, Lskip + 2 * pad), jnp.float32),
            pltpu.VMEM((Lup, Cin), jnp.float32),
        ],
    )

    # Per-step working-set estimate (bytes); only raise the scoped-VMEM limit if needed.
    est_bytes = 4 * (2 * (Cskip * Lskip + Cin * L + Cout * Lskip)
                     + Kt * Cin * Cin + ks * Cout * C_total + ks * Cout * Cout
                     + Cin + 2 * Cout
                     + (C_total + Cout) * (Lskip + 2 * pad) + Lup * Cin)
    vmem_limit = None if est_bytes < (8 << 20) else min(2 * est_bytes, 112 << 20)

    return pl.pallas_call(
        kernel,
        out_shape=jax.ShapeDtypeStruct((N, Cout, Lskip), jnp.float32),
        grid_spec=grid_spec,
        compiler_params=pltpu.CompilerParams(
            dimension_semantics=("parallel",),
            vmem_limit_bytes=vmem_limit),
    )(x_skip, x, wt_taps, bt_cf, w1_taps, b1, w2_taps, b2)


def unet_up(x_skip, x, params):
    """Prefer the stride-2 store interleave; fall back to the selection-matmul
    interleave if this Mosaic build rejects strided ref stores."""
    try:
        return jax.block_until_ready(
            unet_up_pallas(x_skip, x, params, strided_interleave=True))
    except Exception:
        return jax.block_until_ready(
            unet_up_pallas(x_skip, x, params, strided_interleave=False))


def ref_forward(x_skip, x, params):
    """Pure-JAX reference matching PyTorch UNetUp.eval() semantics."""
    (wt, bt, w1, cb1, g1, be1, rm1, rv1, w2, cb2, g2, be2, rm2, rv2) = params
    eps = 1e-5
    ks = w1.shape[-1]
    Kt = wt.shape[-1]
    pad = ks // 2
    pad_t = (ks - 1) // 2 - 1

    # ConvTranspose1d(stride=2, padding=pad_t) == lhs-dilated cross-correlation
    # with the kernel flipped and in/out channels swapped.
    wt_f = jnp.flip(jnp.transpose(wt, (1, 0, 2)), axis=-1)     # (Cin, Cin, Kt)
    up = jax.lax.conv_general_dilated(
        x, wt_f, window_strides=(1,),
        padding=[(Kt - 1 - pad_t, Kt - 1 - pad_t)],
        lhs_dilation=(2,), dimension_numbers=("NCH", "OIH", "NCH"))
    up = up + bt[None, :, None]

    diff = x_skip.shape[2] - up.shape[2]
    up = jnp.pad(up, ((0, 0), (0, 0), (diff // 2, diff - diff // 2)))
    cat = jnp.concatenate([x_skip, up], axis=1)

    def conv_bn_relu(h, W, cb, g, be, rm, rv):
        y = jax.lax.conv_general_dilated(
            h, W, window_strides=(1,), padding=[(pad, pad)],
            dimension_numbers=("NCH", "OIH", "NCH"))
        y = y + cb[None, :, None]
        y = (y - rm[None, :, None]) / jnp.sqrt(rv[None, :, None] + eps)
        y = y * g[None, :, None] + be[None, :, None]
        return jnp.maximum(y, 0.0)

    h = conv_bn_relu(cat, w1, cb1, g1, be1, rm1, rv1)
    return conv_bn_relu(h, w2, cb2, g2, be2, rm2, rv2)


def make_params(key, in_channels, in_channels_skip, out_channels, ks):
    c_total = in_channels + in_channels_skip
    kt = ks - 1
    keys = jax.random.split(key, 14)
    wt = 0.3 * jax.random.normal(keys[0], (in_channels, in_channels, kt), jnp.float32)
    bt = 0.1 * jax.random.normal(keys[1], (in_channels,), jnp.float32)
    w1 = 0.3 * jax.random.normal(keys[2], (out_channels, c_total, ks), jnp.float32)
    cb1 = 0.1 * jax.random.normal(keys[3], (out_channels,), jnp.float32)
    g1 = jax.random.uniform(keys[4], (out_channels,), jnp.float32, 0.5, 1.5)
    be1 = 0.1 * jax.random.normal(keys[5], (out_channels,), jnp.float32)
    rm1 = 0.1 * jax.random.normal(keys[6], (out_channels,), jnp.float32)
    rv1 = jax.random.uniform(keys[7], (out_channels,), jnp.float32, 0.5, 1.5)
    w2 = 0.3 * jax.random.normal(keys[8], (out_channels, out_channels, ks), jnp.float32)
    cb2 = 0.1 * jax.random.normal(keys[9], (out_channels,), jnp.float32)
    g2 = jax.random.uniform(keys[10], (out_channels,), jnp.float32, 0.5, 1.5)
    be2 = 0.1 * jax.random.normal(keys[11], (out_channels,), jnp.float32)
    rm2 = 0.1 * jax.random.normal(keys[12], (out_channels,), jnp.float32)
    rv2 = jax.random.uniform(keys[13], (out_channels,), jnp.float32, 0.5, 1.5)
    return (wt, bt, w1, cb1, g1, be1, rm1, rv1, w2, cb2, g2, be2, rm2, rv2)


if __name__ == "__main__":
    # UNetUp(in_channels=8, in_channels_skip=4, out_channels=8, ks=3, p=0.25)
    # X: (N, 8, L=8) low-res feature, X_skip: (N, 4, 16) skip connection.
    N, Cin, Cskip, Cout, L, KS = 2, 8, 4, 8, 8, 3
    key = jax.random.PRNGKey(0)
    kx, ksk, kp = jax.random.split(key, 3)
    x = jax.random.normal(kx, (N, Cin, L), jnp.float32)
    x_skip = jax.random.normal(ksk, (N, Cskip, 2 * L), jnp.float32)
    params = make_params(kp, Cin, Cskip, Cout, KS)

    out = unet_up(x_skip, x, params)
    ref = jax.block_until_ready(ref_forward(x_skip, x, params))

    assert out.shape == (N, Cout, 2 * L), out.shape
    err = float(jnp.max(jnp.abs(out - ref)))
    assert jnp.allclose(out, ref, atol=1e-4, rtol=1e-4), err
    print("KERNEL_OK")
</pallas_src>

<mosaic_0001>
module attributes {stable_mosaic.version = 11 : i64} {
  func.func @_unet_up_kernel(%arg0: i32, %arg1: memref<1x4x16xf32, #tpu.memory_space<vmem>>, %arg2: memref<1x8x8xf32, #tpu.memory_space<vmem>>, %arg3: memref<2x8x8xf32, #tpu.memory_space<vmem>>, %arg4: memref<8x1xf32, #tpu.memory_space<vmem>>, %arg5: memref<3x8x12xf32, #tpu.memory_space<vmem>>, %arg6: memref<8x1xf32, #tpu.memory_space<vmem>>, %arg7: memref<3x8x8xf32, #tpu.memory_space<vmem>>, %arg8: memref<8x1xf32, #tpu.memory_space<vmem>>, %arg9: memref<1x8x16xf32, #tpu.memory_space<vmem>>, %arg10: memref<12x18xf32, #tpu.memory_space<vmem>>, %arg11: memref<8x18xf32, #tpu.memory_space<vmem>>, %arg12: memref<16x8xf32, #tpu.memory_space<vmem>>) attributes {dimension_semantics = [#tpu.dimension_semantics<parallel>], iteration_bounds = array<i64: 2>, scalar_prefetch = 0 : i64, scratch_operands = 3 : i64, tpu.core_type = #tpu.core_type<tc>, window_params = [{transform_indices = @transform_0, window_bounds = array<i64: 1, 4, 16>}, {transform_indices = @transform_1, window_bounds = array<i64: 1, 8, 8>}, {pipeline_mode = #tpu.pipeline_mode<synchronous>, transform_indices = @transform_2, window_bounds = array<i64: 2, 8, 8>}, {pipeline_mode = #tpu.pipeline_mode<synchronous>, transform_indices = @transform_3, window_bounds = array<i64: 8, 1>}, {pipeline_mode = #tpu.pipeline_mode<synchronous>, transform_indices = @transform_4, window_bounds = array<i64: 3, 8, 12>}, {pipeline_mode = #tpu.pipeline_mode<synchronous>, transform_indices = @transform_5, window_bounds = array<i64: 8, 1>}, {pipeline_mode = #tpu.pipeline_mode<synchronous>, transform_indices = @transform_6, window_bounds = array<i64: 3, 8, 8>}, {pipeline_mode = #tpu.pipeline_mode<synchronous>, transform_indices = @transform_7, window_bounds = array<i64: 8, 1>}, {transform_indices = @transform_8, window_bounds = array<i64: 1, 8, 16>}]} {
    %cst = arith.constant 0.000000e+00 : f32
    %0 = vector.broadcast %cst : f32 to vector<12x1xf32>
    %c0 = arith.constant 0 : index
    %c0_0 = arith.constant 0 : index
    %1 = vector.load %arg10[%c0, %c0_0] : memref<12x18xf32, #tpu.memory_space<vmem>>, vector<12x1xf32>
    tpu.vector_store %arg10[%c0, %c0_0], %0 {strides = array<i32>} : memref<12x18xf32, #tpu.memory_space<vmem>>, vector<12x1xf32>,
    %cst_1 = arith.constant 0.000000e+00 : f32
    %2 = vector.broadcast %cst_1 : f32 to vector<12x1xf32>
    %c0_2 = arith.constant 0 : index
    %c17 = arith.constant 17 : index
    %3 = vector.load %arg10[%c0_2, %c17] : memref<12x18xf32, #tpu.memory_space<vmem>>, vector<12x1xf32>
    tpu.vector_store %arg10[%c0_2, %c17], %2 {strides = array<i32>} : memref<12x18xf32, #tpu.memory_space<vmem>>, vector<12x1xf32>,
    %cst_3 = arith.constant 0.000000e+00 : f32
    %4 = vector.broadcast %cst_3 : f32 to vector<8x1xf32>
    %c0_4 = arith.constant 0 : index
    %c0_5 = arith.constant 0 : index
    %5 = vector.load %arg11[%c0_4, %c0_5] : memref<8x18xf32, #tpu.memory_space<vmem>>, vector<8x1xf32>
    tpu.vector_store %arg11[%c0_4, %c0_5], %4 {strides = array<i32>} : memref<8x18xf32, #tpu.memory_space<vmem>>, vector<8x1xf32>,
    %cst_6 = arith.constant 0.000000e+00 : f32
    %6 = vector.broadcast %cst_6 : f32 to vector<8x1xf32>
    %c0_7 = arith.constant 0 : index
    %c17_8 = arith.constant 17 : index
    %7 = vector.load %arg11[%c0_7, %c17_8] : memref<8x18xf32, #tpu.memory_space<vmem>>, vector<8x1xf32>
    tpu.vector_store %arg11[%c0_7, %c17_8], %6 {strides = array<i32>} : memref<8x18xf32, #tpu.memory_space<vmem>>, vector<8x1xf32>,
    %c0_9 = arith.constant 0 : index
    %c0_10 = arith.constant 0 : index
    %c0_11 = arith.constant 0 : index
    %8 = vector.load %arg1[%c0_9, %c0_10, %c0_11] : memref<1x4x16xf32, #tpu.memory_space<vmem>>, vector<1x4x16xf32>
    %9 = vector.shape_cast %8 : vector<1x4x16xf32> to vector<4x16xf32>
    %c0_12 = arith.constant 0 : index
    %c1 = arith.constant 1 : index
    %10 = vector.load %arg10[%c0_12, %c1] : memref<12x18xf32, #tpu.memory_space<vmem>>, vector<4x16xf32>
    tpu.vector_store %arg10[%c0_12, %c1], %9 {strides = array<i32>} : memref<12x18xf32, #tpu.memory_space<vmem>>, vector<4x16xf32>,
    %c0_13 = arith.constant 0 : index
    %c0_14 = arith.constant 0 : index
    %c0_15 = arith.constant 0 : index
    %11 = vector.load %arg2[%c0_13, %c0_14, %c0_15] : memref<1x8x8xf32, #tpu.memory_space<vmem>>, vector<1x8x8xf32>
    %12 = vector.shape_cast %11 : vector<1x8x8xf32> to vector<8x8xf32>
    %13 = tpu.transpose %12, [1, 0] : vector<8x8xf32> -> vector<8x8xf32>
    %cst_16 = arith.constant 0.000000e+00 : f32
    %14 = vector.broadcast %cst_16 : f32 to vector<8x8xf32>
    %cst_17 = arith.constant 0.000000e+00 : f32
    %15 = vector.broadcast %cst_17 : f32 to vector<8x8xf32>
    %c0_18 = arith.constant 0 : index
    %c0_19 = arith.constant 0 : index
    %c0_20 = arith.constant 0 : index
    %16 = vector.load %arg3[%c0_18, %c0_19, %c0_20] : memref<2x8x8xf32, #tpu.memory_space<vmem>>, vector<1x8x8xf32>
    %17 = vector.shape_cast %16 : vector<1x8x8xf32> to vector<8x8xf32>
    %cst_21 = arith.constant dense<0.000000e+00> : vector<8x8xf32>
    %18 = tpu.matmul %13, %17, %cst_21 {dimension_numbers = #tpu.dot_dimension_numbers<[1], [0], [0], [1], [0, 0, 1, 1], [], []>} : vector<8x8xf32>, vector<8x8xf32>, vector<8x8xf32> -> vector<8x8xf32>
    %19 = arith.addf %14, %18 : vector<8x8xf32>
    %c1_22 = arith.constant 1 : index
    %c0_23 = arith.constant 0 : index
    %c0_24 = arith.constant 0 : index
    %20 = vector.load %arg3[%c1_22, %c0_23, %c0_24] : memref<2x8x8xf32, #tpu.memory_space<vmem>>, vector<1x8x8xf32>
    %21 = vector.shape_cast %20 : vector<1x8x8xf32> to vector<8x8xf32>
    %cst_25 = arith.constant dense<0.000000e+00> : vector<8x8xf32>
    %22 = tpu.matmul %13, %21, %cst_25 {dimension_numbers = #tpu.dot_dimension_numbers<[1], [0], [0], [1], [0, 0, 1, 1], [], []>} : vector<8x8xf32>, vector<8x8xf32>, vector<8x8xf32> -> vector<8x8xf32>
    %23 = arith.addf %15, %22 : vector<8x8xf32>
    %c0_26 = arith.constant 0 : index
    %c0_27 = arith.constant 0 : index
    %24 = tpu.strided_load %arg12[%c0_26, %c0_27] {strides = array<i32: 2, 1>} : memref<16x8xf32, #tpu.memory_space<vmem>>, vector<8x8xf32>
    tpu.strided_store %arg12[%c0_26, %c0_27], %19 {strides = array<i32: 2, 1>} : memref<16x8xf32, #tpu.memory_space<vmem>>, vector<8x8xf32>
    %c1_28 = arith.constant 1 : index
    %c0_29 = arith.constant 0 : index
    %25 = tpu.strided_load %arg12[%c1_28, %c0_29] {strides = array<i32: 2, 1>} : memref<16x8xf32, #tpu.memory_space<vmem>>, vector<8x8xf32>
    tpu.strided_store %arg12[%c1_28, %c0_29], %23 {strides = array<i32: 2, 1>} : memref<16x8xf32, #tpu.memory_space<vmem>>, vector<8x8xf32>
    %c0_30 = arith.constant 0 : index
    %c0_31 = arith.constant 0 : index
    %26 = vector.load %arg12[%c0_30, %c0_31] : memref<16x8xf32, #tpu.memory_space<vmem>>, vector<16x8xf32>
    %27 = tpu.transpose %26, [1, 0] : vector<16x8xf32> -> vector<8x16xf32>
    %c0_32 = arith.constant 0 : index
    %c0_33 = arith.constant 0 : index
    %28 = vector.load %arg4[%c0_32, %c0_33] : memref<8x1xf32, #tpu.memory_space<vmem>>, vector<8x1xf32>
    %29 = vector.broadcast %28 : vector<8x1xf32> to vector<8x16xf32>
    %30 = arith.addf %27, %29 : vector<8x16xf32>
    %c4 = arith.constant 4 : index
    %c1_34 = arith.constant 1 : index
    %31 = vector.load %arg10[%c4, %c1_34] : memref<12x18xf32, #tpu.memory_space<vmem>>, vector<8x16xf32>
    tpu.vector_store %arg10[%c4, %c1_34], %30 {strides = array<i32>} : memref<12x18xf32, #tpu.memory_space<vmem>>, vector<8x16xf32>,
    %cst_35 = arith.constant 0.000000e+00 : f32
    %32 = vector.broadcast %cst_35 : f32 to vector<8x16xf32>
    %c0_36 = arith.constant 0 : index
    %c0_37 = arith.constant 0 : index
    %c0_38 = arith.constant 0 : index
    %33 = vector.load %arg5[%c0_36, %c0_37, %c0_38] : memref<3x8x12xf32, #tpu.memory_space<vmem>>, vector<1x8x12xf32>
    %34 = vector.shape_cast %33 : vector<1x8x12xf32> to vector<8x12xf32>
    %c0_39 = arith.constant 0 : index
    %c0_40 = arith.constant 0 : index
    %35 = vector.load %arg10[%c0_39, %c0_40] : memref<12x18xf32, #tpu.memory_space<vmem>>, vector<12x16xf32>
    %cst_41 = arith.constant dense<0.000000e+00> : vector<8x16xf32>
    %36 = tpu.matmul %34, %35, %cst_41 {dimension_numbers = #tpu.dot_dimension_numbers<[1], [0], [0], [1], [0, 0, 1, 1], [], []>} : vector<8x12xf32>, vector<12x16xf32>, vector<8x16xf32> -> vector<8x16xf32>
    %37 = arith.addf %32, %36 : vector<8x16xf32>
    %c1_42 = arith.constant 1 : index
    %c0_43 = arith.constant 0 : index
    %c0_44 = arith.constant 0 : index
    %38 = vector.load %arg5[%c1_42, %c0_43, %c0_44] : memref<3x8x12xf32, #tpu.memory_space<vmem>>, vector<1x8x12xf32>
    %39 = vector.shape_cast %38 : vector<1x8x12xf32> to vector<8x12xf32>
    %c0_45 = arith.constant 0 : index
    %c1_46 = arith.constant 1 : index
    %40 = vector.load %arg10[%c0_45, %c1_46] : memref<12x18xf32, #tpu.memory_space<vmem>>, vector<12x16xf32>
    %cst_47 = arith.constant dense<0.000000e+00> : vector<8x16xf32>
    %41 = tpu.matmul %39, %40, %cst_47 {dimension_numbers = #tpu.dot_dimension_numbers<[1], [0], [0], [1], [0, 0, 1, 1], [], []>} : vector<8x12xf32>, vector<12x16xf32>, vector<8x16xf32> -> vector<8x16xf32>
    %42 = arith.addf %37, %41 : vector<8x16xf32>
    %c2 = arith.constant 2 : index
    %c0_48 = arith.constant 0 : index
    %c0_49 = arith.constant 0 : index
    %43 = vector.load %arg5[%c2, %c0_48, %c0_49] : memref<3x8x12xf32, #tpu.memory_space<vmem>>, vector<1x8x12xf32>
    %44 = vector.shape_cast %43 : vector<1x8x12xf32> to vector<8x12xf32>
    %c0_50 = arith.constant 0 : index
    %c2_51 = arith.constant 2 : index
    %45 = vector.load %arg10[%c0_50, %c2_51] : memref<12x18xf32, #tpu.memory_space<vmem>>, vector<12x16xf32>
    %cst_52 = arith.constant dense<0.000000e+00> : vector<8x16xf32>
    %46 = tpu.matmul %44, %45, %cst_52 {dimension_numbers = #tpu.dot_dimension_numbers<[1], [0], [0], [1], [0, 0, 1, 1], [], []>} : vector<8x12xf32>, vector<12x16xf32>, vector<8x16xf32> -> vector<8x16xf32>
    %47 = arith.addf %42, %46 : vector<8x16xf32>
    %c0_53 = arith.constant 0 : index
    %c0_54 = arith.constant 0 : index
    %48 = vector.load %arg6[%c0_53, %c0_54] : memref<8x1xf32, #tpu.memory_space<vmem>>, vector<8x1xf32>
    %49 = vector.broadcast %48 : vector<8x1xf32> to vector<8x16xf32>
    %50 = arith.addf %47, %49 : vector<8x16xf32>
    %cst_55 = arith.constant 0.000000e+00 : f32
    %51 = vector.broadcast %cst_55 : f32 to vector<8x16xf32>
    %52 = arith.maximumf %50, %51 : vector<8x16xf32>
    %c0_56 = arith.constant 0 : index
    %c1_57 = arith.constant 1 : index
    %53 = vector.load %arg11[%c0_56, %c1_57] : memref<8x18xf32, #tpu.memory_space<vmem>>, vector<8x16xf32>
    tpu.vector_store %arg11[%c0_56, %c1_57], %52 {strides = array<i32>} : memref<8x18xf32, #tpu.memory_space<vmem>>, vector<8x16xf32>,
    %cst_58 = arith.constant 0.000000e+00 : f32
    %54 = vector.broadcast %cst_58 : f32 to vector<8x16xf32>
    %c0_59 = arith.constant 0 : index
    %c0_60 = arith.constant 0 : index
    %c0_61 = arith.constant 0 : index
    %55 = vector.load %arg7[%c0_59, %c0_60, %c0_61] : memref<3x8x8xf32, #tpu.memory_space<vmem>>, vector<1x8x8xf32>
    %56 = vector.shape_cast %55 : vector<1x8x8xf32> to vector<8x8xf32>
    %c0_62 = arith.constant 0 : index
    %c0_63 = arith.constant 0 : index
    %57 = vector.load %arg11[%c0_62, %c0_63] : memref<8x18xf32, #tpu.memory_space<vmem>>, vector<8x16xf32>
    %cst_64 = arith.constant dense<0.000000e+00> : vector<8x16xf32>
    %58 = tpu.matmul %56, %57, %cst_64 {dimension_numbers = #tpu.dot_dimension_numbers<[1], [0], [0], [1], [0, 0, 1, 1], [], []>} : vector<8x8xf32>, vector<8x16xf32>, vector<8x16xf32> -> vector<8x16xf32>
    %59 = arith.addf %54, %58 : vector<8x16xf32>
    %c1_65 = arith.constant 1 : index
    %c0_66 = arith.constant 0 : index
    %c0_67 = arith.constant 0 : index
    %60 = vector.load %arg7[%c1_65, %c0_66, %c0_67] : memref<3x8x8xf32, #tpu.memory_space<vmem>>, vector<1x8x8xf32>
    %61 = vector.shape_cast %60 : vector<1x8x8xf32> to vector<8x8xf32>
    %c0_68 = arith.constant 0 : index
    %c1_69 = arith.constant 1 : index
    %62 = vector.load %arg11[%c0_68, %c1_69] : memref<8x18xf32, #tpu.memory_space<vmem>>, vector<8x16xf32>
    %cst_70 = arith.constant dense<0.000000e+00> : vector<8x16xf32>
    %63 = tpu.matmul %61, %62, %cst_70 {dimension_numbers = #tpu.dot_dimension_numbers<[1], [0], [0], [1], [0, 0, 1, 1], [], []>} : vector<8x8xf32>, vector<8x16xf32>, vector<8x16xf32> -> vector<8x16xf32>
    %64 = arith.addf %59, %63 : vector<8x16xf32>
    %c2_71 = arith.constant 2 : index
    %c0_72 = arith.constant 0 : index
    %c0_73 = arith.constant 0 : index
    %65 = vector.load %arg7[%c2_71, %c0_72, %c0_73] : memref<3x8x8xf32, #tpu.memory_space<vmem>>, vector<1x8x8xf32>
    %66 = vector.shape_cast %65 : vector<1x8x8xf32> to vector<8x8xf32>
    %c0_74 = arith.constant 0 : index
    %c2_75 = arith.constant 2 : index
    %67 = vector.load %arg11[%c0_74, %c2_75] : memref<8x18xf32, #tpu.memory_space<vmem>>, vector<8x16xf32>
    %cst_76 = arith.constant dense<0.000000e+00> : vector<8x16xf32>
    %68 = tpu.matmul %66, %67, %cst_76 {dimension_numbers = #tpu.dot_dimension_numbers<[1], [0], [0], [1], [0, 0, 1, 1], [], []>} : vector<8x8xf32>, vector<8x16xf32>, vector<8x16xf32> -> vector<8x16xf32>
    %69 = arith.addf %64, %68 : vector<8x16xf32>
    %c0_77 = arith.constant 0 : index
    %c0_78 = arith.constant 0 : index
    %70 = vector.load %arg8[%c0_77, %c0_78] : memref<8x1xf32, #tpu.memory_space<vmem>>, vector<8x1xf32>
    %71 = vector.broadcast %70 : vector<8x1xf32> to vector<8x16xf32>
    %72 = arith.addf %69, %71 : vector<8x16xf32>
    %cst_79 = arith.constant 0.000000e+00 : f32
    %73 = vector.broadcast %cst_79 : f32 to vector<8x16xf32>
    %74 = arith.maximumf %72, %73 : vector<8x16xf32>
    %c0_80 = arith.constant 0 : index
    %c0_81 = arith.constant 0 : index
    %c0_82 = arith.constant 0 : index
    %75 = vector.load %arg9[%c0_80, %c0_81, %c0_82] : memref<1x8x16xf32, #tpu.memory_space<vmem>>, vector<1x8x16xf32>
    %76 = vector.shape_cast %75 : vector<1x8x16xf32> to vector<8x16xf32>
    %77 = vector.shape_cast %74 : vector<8x16xf32> to vector<1x8x16xf32>
    tpu.vector_store %arg9[%c0_80, %c0_81, %c0_82], %77 {strides = array<i32>} : memref<1x8x16xf32, #tpu.memory_space<vmem>>, vector<1x8x16xf32>,
    return
  }
  func.func @transform_0(%arg0: i32) -> (i32, i32, i32) {
    %c0_i32 = arith.constant 0 : i32
    %c0_i32_0 = arith.constant 0 : i32
    %c0_i32_1 = arith.constant 0 : i32
    return %arg0, %c0_i32, %c0_i32_0 : i32, i32, i32
  }
  func.func @transform_1(%arg0: i32) -> (i32, i32, i32) {
    %c0_i32 = arith.constant 0 : i32
    %c0_i32_0 = arith.constant 0 : i32
    %c0_i32_1 = arith.constant 0 : i32
    return %arg0, %c0_i32, %c0_i32_0 : i32, i32, i32
  }
  func.func @transform_2(%arg0: i32) -> (i32, i32, i32) {
    %c0_i32 = arith.constant 0 : i32
    %c0_i32_0 = arith.constant 0 : i32
    %c0_i32_1 = arith.constant 0 : i32
    %c0_i32_2 = arith.constant 0 : i32
    return %c0_i32, %c0_i32_0, %c0_i32_1 : i32, i32, i32
  }
  func.func @transform_3(%arg0: i32) -> (i32, i32) {
    %c0_i32 = arith.constant 0 : i32
    %c0_i32_0 = arith.constant 0 : i32
    %c0_i32_1 = arith.constant 0 : i32
    return %c0_i32, %c0_i32_0 : i32, i32
  }
  func.func @transform_4(%arg0: i32) -> (i32, i32, i32) {
    %c0_i32 = arith.constant 0 : i32
    %c0_i32_0 = arith.constant 0 : i32
    %c0_i32_1 = arith.constant 0 : i32
    %c0_i32_2 = arith.constant 0 : i32
    return %c0_i32, %c0_i32_0, %c0_i32_1 : i32, i32, i32
  }
  func.func @transform_5(%arg0: i32) -> (i32, i32) {
    %c0_i32 = arith.constant 0 : i32
    %c0_i32_0 = arith.constant 0 : i32
    %c0_i32_1 = arith.constant 0 : i32
    return %c0_i32, %c0_i32_0 : i32, i32
  }
  func.func @transform_6(%arg0: i32) -> (i32, i32, i32) {
    %c0_i32 = arith.constant 0 : i32
    %c0_i32_0 = arith.constant 0 : i32
    %c0_i32_1 = arith.constant 0 : i32
    %c0_i32_2 = arith.constant 0 : i32
    return %c0_i32, %c0_i32_0, %c0_i32_1 : i32, i32, i32
  }
  func.func @transform_7(%arg0: i32) -> (i32, i32) {
    %c0_i32 = arith.constant 0 : i32
    %c0_i32_0 = arith.constant 0 : i32
    %c0_i32_1 = arith.constant 0 : i32
    return %c0_i32, %c0_i32_0 : i32, i32
  }
  func.func @transform_8(%arg0: i32) -> (i32, i32, i32) {
    %c0_i32 = arith.constant 0 : i32
    %c0_i32_0 = arith.constant 0 : i32
    %c0_i32_1 = arith.constant 0 : i32
    return %arg0, %c0_i32, %c0_i32_0 : i32, i32, i32
  }
}

module attributes {stable_mosaic.version = 11 : i64} {
  func.func @_unet_up_kernel(%arg0: i32, %arg1: memref<1x4x16xf32, #tpu.memory_space<vmem>>, %arg2: memref<1x8x8xf32, #tpu.memory_space<vmem>>, %arg3: memref<2x8x8xf32, #tpu.memory_space<vmem>>, %arg4: memref<8x1xf32, #tpu.memory_space<vmem>>, %arg5: memref<3x8x12xf32, #tpu.memory_space<vmem>>, %arg6: memref<8x1xf32, #tpu.memory_space<vmem>>, %arg7: memref<3x8x8xf32, #tpu.memory_space<vmem>>, %arg8: memref<8x1xf32, #tpu.memory_space<vmem>>, %arg9: memref<1x8x16xf32, #tpu.memory_space<vmem>>, %arg10: memref<12x18xf32, #tpu.memory_space<vmem>>, %arg11: memref<8x18xf32, #tpu.memory_space<vmem>>, %arg12: memref<16x8xf32, #tpu.memory_space<vmem>>) attributes {dimension_semantics = [#tpu.dimension_semantics<parallel>], iteration_bounds = array<i64: 2>, scalar_prefetch = 0 : i64, scratch_operands = 3 : i64, tpu.core_type = #tpu.core_type<tc>, window_params = [{transform_indices = @transform_0, window_bounds = array<i64: 1, 4, 16>}, {transform_indices = @transform_1, window_bounds = array<i64: 1, 8, 8>}, {pipeline_mode = #tpu.pipeline_mode<synchronous>, transform_indices = @transform_2, window_bounds = array<i64: 2, 8, 8>}, {pipeline_mode = #tpu.pipeline_mode<synchronous>, transform_indices = @transform_3, window_bounds = array<i64: 8, 1>}, {pipeline_mode = #tpu.pipeline_mode<synchronous>, transform_indices = @transform_4, window_bounds = array<i64: 3, 8, 12>}, {pipeline_mode = #tpu.pipeline_mode<synchronous>, transform_indices = @transform_5, window_bounds = array<i64: 8, 1>}, {pipeline_mode = #tpu.pipeline_mode<synchronous>, transform_indices = @transform_6, window_bounds = array<i64: 3, 8, 8>}, {pipeline_mode = #tpu.pipeline_mode<synchronous>, transform_indices = @transform_7, window_bounds = array<i64: 8, 1>}, {transform_indices = @transform_8, window_bounds = array<i64: 1, 8, 16>}]} {
    %cst = arith.constant 0.000000e+00 : f32
    %0 = vector.broadcast %cst : f32 to vector<12x1xf32>
    %c0 = arith.constant 0 : index
    %c0_0 = arith.constant 0 : index
    %1 = vector.load %arg10[%c0, %c0_0] : memref<12x18xf32, #tpu.memory_space<vmem>>, vector<12x1xf32>
    tpu.vector_store %arg10[%c0, %c0_0], %0 {strides = array<i32>} : memref<12x18xf32, #tpu.memory_space<vmem>>, vector<12x1xf32>,
    %cst_1 = arith.constant 0.000000e+00 : f32
    %2 = vector.broadcast %cst_1 : f32 to vector<12x1xf32>
    %c0_2 = arith.constant 0 : index
    %c17 = arith.constant 17 : index
    %3 = vector.load %arg10[%c0_2, %c17] : memref<12x18xf32, #tpu.memory_space<vmem>>, vector<12x1xf32>
    tpu.vector_store %arg10[%c0_2, %c17], %2 {strides = array<i32>} : memref<12x18xf32, #tpu.memory_space<vmem>>, vector<12x1xf32>,
    %cst_3 = arith.constant 0.000000e+00 : f32
    %4 = vector.broadcast %cst_3 : f32 to vector<8x1xf32>
    %c0_4 = arith.constant 0 : index
    %c0_5 = arith.constant 0 : index
    %5 = vector.load %arg11[%c0_4, %c0_5] : memref<8x18xf32, #tpu.memory_space<vmem>>, vector<8x1xf32>
    tpu.vector_store %arg11[%c0_4, %c0_5], %4 {strides = array<i32>} : memref<8x18xf32, #tpu.memory_space<vmem>>, vector<8x1xf32>,
    %cst_6 = arith.constant 0.000000e+00 : f32
    %6 = vector.broadcast %cst_6 : f32 to vector<8x1xf32>
    %c0_7 = arith.constant 0 : index
    %c17_8 = arith.constant 17 : index
    %7 = vector.load %arg11[%c0_7, %c17_8] : memref<8x18xf32, #tpu.memory_space<vmem>>, vector<8x1xf32>
    tpu.vector_store %arg11[%c0_7, %c17_8], %6 {strides = array<i32>} : memref<8x18xf32, #tpu.memory_space<vmem>>, vector<8x1xf32>,
    %c0_9 = arith.constant 0 : index
    %c0_10 = arith.constant 0 : index
    %c0_11 = arith.constant 0 : index
    %8 = vector.load %arg1[%c0_9, %c0_10, %c0_11] : memref<1x4x16xf32, #tpu.memory_space<vmem>>, vector<1x4x16xf32>
    %9 = vector.shape_cast %8 : vector<1x4x16xf32> to vector<4x16xf32>
    %c0_12 = arith.constant 0 : index
    %c1 = arith.constant 1 : index
    %10 = vector.load %arg10[%c0_12, %c1] : memref<12x18xf32, #tpu.memory_space<vmem>>, vector<4x16xf32>
    tpu.vector_store %arg10[%c0_12, %c1], %9 {strides = array<i32>} : memref<12x18xf32, #tpu.memory_space<vmem>>, vector<4x16xf32>,
    %c0_13 = arith.constant 0 : index
    %c0_14 = arith.constant 0 : index
    %c0_15 = arith.constant 0 : index
    %11 = vector.load %arg2[%c0_13, %c0_14, %c0_15] : memref<1x8x8xf32, #tpu.memory_space<vmem>>, vector<1x8x8xf32>
    %12 = vector.shape_cast %11 : vector<1x8x8xf32> to vector<8x8xf32>
    %13 = tpu.transpose %12, [1, 0] : vector<8x8xf32> -> vector<8x8xf32>
    %cst_16 = arith.constant 0.000000e+00 : f32
    %14 = vector.broadcast %cst_16 : f32 to vector<8x8xf32>
    %cst_17 = arith.constant 0.000000e+00 : f32
    %15 = vector.broadcast %cst_17 : f32 to vector<8x8xf32>
    %c0_18 = arith.constant 0 : index
    %c0_19 = arith.constant 0 : index
    %c0_20 = arith.constant 0 : index
    %16 = vector.load %arg3[%c0_18, %c0_19, %c0_20] : memref<2x8x8xf32, #tpu.memory_space<vmem>>, vector<1x8x8xf32>
    %17 = vector.shape_cast %16 : vector<1x8x8xf32> to vector<8x8xf32>
    %cst_21 = arith.constant dense<0.000000e+00> : vector<8x8xf32>
    %18 = tpu.matmul %13, %17, %cst_21 {dimension_numbers = #tpu.dot_dimension_numbers<[1], [0], [0], [1], [0, 0, 1, 1], [], []>} : vector<8x8xf32>, vector<8x8xf32>, vector<8x8xf32> -> vector<8x8xf32>
    %19 = arith.addf %14, %18 : vector<8x8xf32>
    %c1_22 = arith.constant 1 : index
    %c0_23 = arith.constant 0 : index
    %c0_24 = arith.constant 0 : index
    %20 = vector.load %arg3[%c1_22, %c0_23, %c0_24] : memref<2x8x8xf32, #tpu.memory_space<vmem>>, vector<1x8x8xf32>
    %21 = vector.shape_cast %20 : vector<1x8x8xf32> to vector<8x8xf32>
    %cst_25 = arith.constant dense<0.000000e+00> : vector<8x8xf32>
    %22 = tpu.matmul %13, %21, %cst_25 {dimension_numbers = #tpu.dot_dimension_numbers<[1], [0], [0], [1], [0, 0, 1, 1], [], []>} : vector<8x8xf32>, vector<8x8xf32>, vector<8x8xf32> -> vector<8x8xf32>
    %23 = arith.addf %15, %22 : vector<8x8xf32>
    %24 = tpu.iota {dimensions = array<i32: 0>} : vector<16x8xi32>
    %25 = tpu.iota {dimensions = array<i32: 1>} : vector<16x8xi32>
    %c2_i32 = arith.constant 2 : i32
    %26 = vector.broadcast %c2_i32 : i32 to vector<16x8xi32>
    %27 = arith.muli %26, %25 : vector<16x8xi32>
    %28 = arith.cmpi eq, %24, %27 : vector<16x8xi32>
    %29 = arith.extui %28 : vector<16x8xi1> to vector<16x8xi32>
    %30 = arith.sitofp %29 : vector<16x8xi32> to vector<16x8xf32>
    %c2_i32_26 = arith.constant 2 : i32
    %31 = vector.broadcast %c2_i32_26 : i32 to vector<16x8xi32>
    %32 = arith.muli %31, %25 : vector<16x8xi32>
    %c1_i32 = arith.constant 1 : i32
    %33 = vector.broadcast %c1_i32 : i32 to vector<16x8xi32>
    %34 = arith.addi %32, %33 : vector<16x8xi32>
    %35 = arith.cmpi eq, %24, %34 : vector<16x8xi32>
    %36 = arith.extui %35 : vector<16x8xi1> to vector<16x8xi32>
    %37 = arith.sitofp %36 : vector<16x8xi32> to vector<16x8xf32>
    %cst_27 = arith.constant dense<0.000000e+00> : vector<16x8xf32>
    %38 = tpu.matmul %30, %19, %cst_27 {dimension_numbers = #tpu.dot_dimension_numbers<[1], [0], [0], [1], [0, 0, 1, 1], [], []>} : vector<16x8xf32>, vector<8x8xf32>, vector<16x8xf32> -> vector<16x8xf32>
    %cst_28 = arith.constant dense<0.000000e+00> : vector<16x8xf32>
    %39 = tpu.matmul %37, %23, %cst_28 {dimension_numbers = #tpu.dot_dimension_numbers<[1], [0], [0], [1], [0, 0, 1, 1], [], []>} : vector<16x8xf32>, vector<8x8xf32>, vector<16x8xf32> -> vector<16x8xf32>
    %40 = arith.addf %38, %39 : vector<16x8xf32>
    %41 = tpu.transpose %40, [1, 0] : vector<16x8xf32> -> vector<8x16xf32>
    %c0_29 = arith.constant 0 : index
    %c0_30 = arith.constant 0 : index
    %42 = vector.load %arg4[%c0_29, %c0_30] : memref<8x1xf32, #tpu.memory_space<vmem>>, vector<8x1xf32>
    %43 = vector.broadcast %42 : vector<8x1xf32> to vector<8x16xf32>
    %44 = arith.addf %41, %43 : vector<8x16xf32>
    %c4 = arith.constant 4 : index
    %c1_31 = arith.constant 1 : index
    %45 = vector.load %arg10[%c4, %c1_31] : memref<12x18xf32, #tpu.memory_space<vmem>>, vector<8x16xf32>
    tpu.vector_store %arg10[%c4, %c1_31], %44 {strides = array<i32>} : memref<12x18xf32, #tpu.memory_space<vmem>>, vector<8x16xf32>,
    %cst_32 = arith.constant 0.000000e+00 : f32
    %46 = vector.broadcast %cst_32 : f32 to vector<8x16xf32>
    %c0_33 = arith.constant 0 : index
    %c0_34 = arith.constant 0 : index
    %c0_35 = arith.constant 0 : index
    %47 = vector.load %arg5[%c0_33, %c0_34, %c0_35] : memref<3x8x12xf32, #tpu.memory_space<vmem>>, vector<1x8x12xf32>
    %48 = vector.shape_cast %47 : vector<1x8x12xf32> to vector<8x12xf32>
    %c0_36 = arith.constant 0 : index
    %c0_37 = arith.constant 0 : index
    %49 = vector.load %arg10[%c0_36, %c0_37] : memref<12x18xf32, #tpu.memory_space<vmem>>, vector<12x16xf32>
    %cst_38 = arith.constant dense<0.000000e+00> : vector<8x16xf32>
    %50 = tpu.matmul %48, %49, %cst_38 {dimension_numbers = #tpu.dot_dimension_numbers<[1], [0], [0], [1], [0, 0, 1, 1], [], []>} : vector<8x12xf32>, vector<12x16xf32>, vector<8x16xf32> -> vector<8x16xf32>
    %51 = arith.addf %46, %50 : vector<8x16xf32>
    %c1_39 = arith.constant 1 : index
    %c0_40 = arith.constant 0 : index
    %c0_41 = arith.constant 0 : index
    %52 = vector.load %arg5[%c1_39, %c0_40, %c0_41] : memref<3x8x12xf32, #tpu.memory_space<vmem>>, vector<1x8x12xf32>
    %53 = vector.shape_cast %52 : vector<1x8x12xf32> to vector<8x12xf32>
    %c0_42 = arith.constant 0 : index
    %c1_43 = arith.constant 1 : index
    %54 = vector.load %arg10[%c0_42, %c1_43] : memref<12x18xf32, #tpu.memory_space<vmem>>, vector<12x16xf32>
    %cst_44 = arith.constant dense<0.000000e+00> : vector<8x16xf32>
    %55 = tpu.matmul %53, %54, %cst_44 {dimension_numbers = #tpu.dot_dimension_numbers<[1], [0], [0], [1], [0, 0, 1, 1], [], []>} : vector<8x12xf32>, vector<12x16xf32>, vector<8x16xf32> -> vector<8x16xf32>
    %56 = arith.addf %51, %55 : vector<8x16xf32>
    %c2 = arith.constant 2 : index
    %c0_45 = arith.constant 0 : index
    %c0_46 = arith.constant 0 : index
    %57 = vector.load %arg5[%c2, %c0_45, %c0_46] : memref<3x8x12xf32, #tpu.memory_space<vmem>>, vector<1x8x12xf32>
    %58 = vector.shape_cast %57 : vector<1x8x12xf32> to vector<8x12xf32>
    %c0_47 = arith.constant 0 : index
    %c2_48 = arith.constant 2 : index
    %59 = vector.load %arg10[%c0_47, %c2_48] : memref<12x18xf32, #tpu.memory_space<vmem>>, vector<12x16xf32>
    %cst_49 = arith.constant dense<0.000000e+00> : vector<8x16xf32>
    %60 = tpu.matmul %58, %59, %cst_49 {dimension_numbers = #tpu.dot_dimension_numbers<[1], [0], [0], [1], [0, 0, 1, 1], [], []>} : vector<8x12xf32>, vector<12x16xf32>, vector<8x16xf32> -> vector<8x16xf32>
    %61 = arith.addf %56, %60 : vector<8x16xf32>
    %c0_50 = arith.constant 0 : index
    %c0_51 = arith.constant 0 : index
    %62 = vector.load %arg6[%c0_50, %c0_51] : memref<8x1xf32, #tpu.memory_space<vmem>>, vector<8x1xf32>
    %63 = vector.broadcast %62 : vector<8x1xf32> to vector<8x16xf32>
    %64 = arith.addf %61, %63 : vector<8x16xf32>
    %cst_52 = arith.constant 0.000000e+00 : f32
    %65 = vector.broadcast %cst_52 : f32 to vector<8x16xf32>
    %66 = arith.maximumf %64, %65 : vector<8x16xf32>
    %c0_53 = arith.constant 0 : index
    %c1_54 = arith.constant 1 : index
    %67 = vector.load %arg11[%c0_53, %c1_54] : memref<8x18xf32, #tpu.memory_space<vmem>>, vector<8x16xf32>
    tpu.vector_store %arg11[%c0_53, %c1_54], %66 {strides = array<i32>} : memref<8x18xf32, #tpu.memory_space<vmem>>, vector<8x16xf32>,
    %cst_55 = arith.constant 0.000000e+00 : f32
    %68 = vector.broadcast %cst_55 : f32 to vector<8x16xf32>
    %c0_56 = arith.constant 0 : index
    %c0_57 = arith.constant 0 : index
    %c0_58 = arith.constant 0 : index
    %69 = vector.load %arg7[%c0_56, %c0_57, %c0_58] : memref<3x8x8xf32, #tpu.memory_space<vmem>>, vector<1x8x8xf32>
    %70 = vector.shape_cast %69 : vector<1x8x8xf32> to vector<8x8xf32>
    %c0_59 = arith.constant 0 : index
    %c0_60 = arith.constant 0 : index
    %71 = vector.load %arg11[%c0_59, %c0_60] : memref<8x18xf32, #tpu.memory_space<vmem>>, vector<8x16xf32>
    %cst_61 = arith.constant dense<0.000000e+00> : vector<8x16xf32>
    %72 = tpu.matmul %70, %71, %cst_61 {dimension_numbers = #tpu.dot_dimension_numbers<[1], [0], [0], [1], [0, 0, 1, 1], [], []>} : vector<8x8xf32>, vector<8x16xf32>, vector<8x16xf32> -> vector<8x16xf32>
    %73 = arith.addf %68, %72 : vector<8x16xf32>
    %c1_62 = arith.constant 1 : index
    %c0_63 = arith.constant 0 : index
    %c0_64 = arith.constant 0 : index
    %74 = vector.load %arg7[%c1_62, %c0_63, %c0_64] : memref<3x8x8xf32, #tpu.memory_space<vmem>>, vector<1x8x8xf32>
    %75 = vector.shape_cast %74 : vector<1x8x8xf32> to vector<8x8xf32>
    %c0_65 = arith.constant 0 : index
    %c1_66 = arith.constant 1 : index
    %76 = vector.load %arg11[%c0_65, %c1_66] : memref<8x18xf32, #tpu.memory_space<vmem>>, vector<8x16xf32>
    %cst_67 = arith.constant dense<0.000000e+00> : vector<8x16xf32>
    %77 = tpu.matmul %75, %76, %cst_67 {dimension_numbers = #tpu.dot_dimension_numbers<[1], [0], [0], [1], [0, 0, 1, 1], [], []>} : vector<8x8xf32>, vector<8x16xf32>, vector<8x16xf32> -> vector<8x16xf32>
    %78 = arith.addf %73, %77 : vector<8x16xf32>
    %c2_68 = arith.constant 2 : index
    %c0_69 = arith.constant 0 : index
    %c0_70 = arith.constant 0 : index
    %79 = vector.load %arg7[%c2_68, %c0_69, %c0_70] : memref<3x8x8xf32, #tpu.memory_space<vmem>>, vector<1x8x8xf32>
    %80 = vector.shape_cast %79 : vector<1x8x8xf32> to vector<8x8xf32>
    %c0_71 = arith.constant 0 : index
    %c2_72 = arith.constant 2 : index
    %81 = vector.load %arg11[%c0_71, %c2_72] : memref<8x18xf32, #tpu.memory_space<vmem>>, vector<8x16xf32>
    %cst_73 = arith.constant dense<0.000000e+00> : vector<8x16xf32>
    %82 = tpu.matmul %80, %81, %cst_73 {dimension_numbers = #tpu.dot_dimension_numbers<[1], [0], [0], [1], [0, 0, 1, 1], [], []>} : vector<8x8xf32>, vector<8x16xf32>, vector<8x16xf32> -> vector<8x16xf32>
    %83 = arith.addf %78, %82 : vector<8x16xf32>
    %c0_74 = arith.constant 0 : index
    %c0_75 = arith.constant 0 : index
    %84 = vector.load %arg8[%c0_74, %c0_75] : memref<8x1xf32, #tpu.memory_space<vmem>>, vector<8x1xf32>
    %85 = vector.broadcast %84 : vector<8x1xf32> to vector<8x16xf32>
    %86 = arith.addf %83, %85 : vector<8x16xf32>
    %cst_76 = arith.constant 0.000000e+00 : f32
    %87 = vector.broadcast %cst_76 : f32 to vector<8x16xf32>
    %88 = arith.maximumf %86, %87 : vector<8x16xf32>
    %c0_77 = arith.constant 0 : index
    %c0_78 = arith.constant 0 : index
    %c0_79 = arith.constant 0 : index
    %89 = vector.load %arg9[%c0_77, %c0_78, %c0_79] : memref<1x8x16xf32, #tpu.memory_space<vmem>>, vector<1x8x16xf32>
    %90 = vector.shape_cast %89 : vector<1x8x16xf32> to vector<8x16xf32>
    %91 = vector.shape_cast %88 : vector<8x16xf32> to vector<1x8x16xf32>
    tpu.vector_store %arg9[%c0_77, %c0_78, %c0_79], %91 {strides = array<i32>} : memref<1x8x16xf32, #tpu.memory_space<vmem>>, vector<1x8x16xf32>,
    return
  }
  func.func @transform_0(%arg0: i32) -> (i32, i32, i32) {
    %c0_i32 = arith.constant 0 : i32
    %c0_i32_0 = arith.constant 0 : i32
    %c0_i32_1 = arith.constant 0 : i32
    return %arg0, %c0_i32, %c0_i32_0 : i32, i32, i32
  }
  func.func @transform_1(%arg0: i32) -> (i32, i32, i32) {
    %c0_i32 = arith.constant 0 : i32
    %c0_i32_0 = arith.constant 0 : i32
    %c0_i32_1 = arith.constant 0 : i32
    return %arg0, %c0_i32, %c0_i32_0 : i32, i32, i32
  }
  func.func @transform_2(%arg0: i32) -> (i32, i32, i32) {
    %c0_i32 = arith.constant 0 : i32
    %c0_i32_0 = arith.constant 0 : i32
    %c0_i32_1 = arith.constant 0 : i32
    %c0_i32_2 = arith.constant 0 : i32
    return %c0_i32, %c0_i32_0, %c0_i32_1 : i32, i32, i32
  }
  func.func @transform_3(%arg0: i32) -> (i32, i32) {
    %c0_i32 = arith.constant 0 : i32
    %c0_i32_0 = arith.constant 0 : i32
    %c0_i32_1 = arith.constant 0 : i32
    return %c0_i32, %c0_i32_0 : i32, i32
  }
  func.func @transform_4(%arg0: i32) -> (i32, i32, i32) {
    %c0_i32 = arith.constant 0 : i32
    %c0_i32_0 = arith.constant 0 : i32
    %c0_i32_1 = arith.constant 0 : i32
    %c0_i32_2 = arith.constant 0 : i32
    return %c0_i32, %c0_i32_0, %c0_i32_1 : i32, i32, i32
  }
  func.func @transform_5(%arg0: i32) -> (i32, i32) {
    %c0_i32 = arith.constant 0 : i32
    %c0_i32_0 = arith.constant 0 : i32
    %c0_i32_1 = arith.constant 0 : i32
    return %c0_i32, %c0_i32_0 : i32, i32
  }
  func.func @transform_6(%arg0: i32) -> (i32, i32, i32) {
    %c0_i32 = arith.constant 0 : i32
    %c0_i32_0 = arith.constant 0 : i32
    %c0_i32_1 = arith.constant 0 : i32
    %c0_i32_2 = arith.constant 0 : i32
    return %c0_i32, %c0_i32_0, %c0_i32_1 : i32, i32, i32
  }
  func.func @transform_7(%arg0: i32) -> (i32, i32) {
    %c0_i32 = arith.constant 0 : i32
    %c0_i32_0 = arith.constant 0 : i32
    %c0_i32_1 = arith.constant 0 : i32
    return %c0_i32, %c0_i32_0 : i32, i32
  }
  func.func @transform_8(%arg0: i32) -> (i32, i32, i32) {
    %c0_i32 = arith.constant 0 : i32
    %c0_i32_0 = arith.constant 0 : i32
    %c0_i32_1 = arith.constant 0 : i32
    return %arg0, %c0_i32, %c0_i32_0 : i32, i32, i32
  }
}

</mosaic_0001>

<bundles_post_ra>
// kernel: tpu_custom_call.1
= control target key start
LH: loop header
LB: loop body
LE: loop exit
PB: predicated region body
PF: predicated region fallthrough
CT: control target
= control target key end

     0   :  { %s1977_s0 = inlined_call_operand.hbm [shape: f32[2,4,16], index: 0, kind: input, shape index: {}]   ;;  %s1978_s1 = inlined_call_operand.hbm [shape: f32[2,8,8], index: 1, kind: input, shape index: {}]   ;;  %s1979_s2 = inlined_call_operand.hbm [shape: f32[2,8,8], index: 2, kind: input, shape index: {}]   ;;  %s1980_s3 = inlined_call_operand.vmem [shape: f32[8,1], index: 3, kind: input, shape index: {}]   ;;  %s1981_s4 = inlined_call_operand.vmem [shape: f32[3,8,12], index: 4, kind: input, shape index: {}]   ;;  %s1982_s5 = inlined_call_operand.vmem [shape: f32[8,1], index: 5, kind: input, shape index: {}]   ;;  %s1983_s6 = inlined_call_operand.vmem [shape: f32[3,8,8], index: 6, kind: input, shape index: {}]   ;;  %s1984_s7 = inlined_call_operand.vmem [shape: f32[8,1], index: 7, kind: input, shape index: {}]   ;;  %s1985_s8 = inlined_call_operand.hbm [shape: f32[2,8,16], index: 8, kind: output, shape index: {}]  }
   0x1   :  { %1991 = sst [smem:[#allocation18_spill]] %s1977_s0 }
   0x2   :  { %1992 = sst [smem:[#allocation19_spill]] %s1979_s2 }
   0x3   :  { %13 = vsyncpa [#allocation6], 0 }
   0x4   :  { %15 = vsyncpa [#allocation6 + $0x1], 0 }
   0x5   :  { %16 = vsyncpa [#allocation9], 0 }
   0x6   :  { %18 = vsyncpa [#allocation9 + $0x1], 0 }
   0x7   :  { %19 = vsyncpa [#allocation7], 0 }
   0x8   :  { %21 = vsyncpa [#allocation7 + $0x1], 0  ;;  %s1654_s27 = smov 0   ;;  %s1656_s28 = smov 0  }
   0x9   :  { %s1658_s29 = smov 0   ;;  %s1660_s30 = smov 0  }
   0xa LB: > { %1993 = sst [smem:[#allocation16_spill]] %s1589_s29  ;;  %s1675_s9 = sadd.s32 4294967295, %s1593_s30   ;;  %s1593_s30 = sphi %s1660_s30, %s2018_s30   ;;  %s1589_s29 = sphi %s1658_s29, %s2015_s29   ;;  %s1585_s28 = sphi %s1656_s28, %s2017_s28   ;;  %s1581_s27 = sphi %s1654_s27, %s2016_s27  }
   0xb   : > { %s1238_s10 = sadd.s32 4294967294, %s1593_s30   ;;  %p47_p0 = scmp.ne.s32.totalorder %s1585_s28, %s1581_s27 }
   0xc   : > { %p1986_p1 = scmp.eq.s32.totalorder %s1675_s9, 0  ;;  %p229_p3 = scmp.eq.s32.totalorder %s1238_s10, 1 }
   0xd   : > { %p1239_p5 = scmp.ge.s32.totalorder %s1593_s30, 1  ;;  %p236_p7 = scmp.lt.s32.totalorder %s1593_s30, 3 }
   0xe   : > { %p1684_p4 = por %p1986_p1, %p47_p0  ;;  %p1689_p6 = por %p229_p3, %p47_p0 }
   0xf   : > { %p1694_p8 = pnand %p1239_p5, %p236_p7  ;;  %s1595_s14 = smov [#allocation10]  }
  0x10   : > { %s1994_s11 = scalar_select %p1684_p4, 1, 0 }
  0x11   : > { %s1995_s12 = scalar_select %p1689_p6, 1, 0 }
  0x12   : > { %s1996_s13 = scalar_select %p1694_p8, 1, 0 }
  0x13   : > { %s248_s15 = sshll.u32 %s1595_s14, 4  ;;  %p1357_p9 = pneg %p1694_p8  ;;  %s1698_s15 = int_to_ptr.vmem [resolvable:$true] %s248_s15 }
  0x14   : > { %s1710_s17 = sadd.s32 1, %s1593_s30   ;;  %s34_s18 = sadd.s32 1, %s1589_s29 }
  0x15   : > { %p1705_p11 = pnand %p1357_p9, %p1986_p1  ;;  %s31_s19 = ssub.s32 %s1593_s30, %s1710_s17 }
  0x16   : > { %s1998_s2 = sld [smem:[#allocation19_spill]] }
  0x17   : > { %p1433_p13 = pneg %p1705_p11 }
  0x1c   : > { %s1431_s22 = scalar_lea.hbm %s1998_s2, 256 }
  0x1d   : > { %p1432_p12 = scmp.ne.s32.totalorder %s1998_s2, %s1431_s22  ;;  %p1438_p5 = scmp.lt.u32.totalorder %s1431_s22, %s1998_s2 }
  0x1f   : > { %p1434_p0 = pnand %p1433_p13, %p1432_p12 }
  0x21   : > { %p1435_p3 = pneg %p1434_p0 }
  0x23   : > { %p1440_p7 = pnand %p1438_p5, %p1435_p3 }
  0x25   : > { %1443 = shalt.err (!%p1440_p7)
}
  0x26   : > { %s1444_s10 = scalar_lea.vmem %s1698_s15, 256  ;;  %p1452_p2 = scmp.lt.s32.totalorder %s1698_s15, %s1698_s15 }
  0x27   : > { %p1445_p9 = scmp.ne.s32.totalorder %s1698_s15, %s1444_s10  ;;  %p1453_p6 = scmp.lt.s32.totalorder %s1444_s10, %s1444_s10 }
  0x29   : > { %p1447_p10 = pnand %p1445_p9, %p1433_p13  ;;  %p1454_p4 = por %p1453_p6, %p1452_p2 }
  0x2b   : > { %p1448_p1 = pneg %p1447_p10 }
  0x2d   : > { %p1455_p8 = pnand %p1454_p4, %p1448_p1 }
  0x2f   : > { %1458 = shalt.err (!%p1455_p8)
}
  0x30   : > { %s1596_s14 = smov 128   ;;  %s1597_s20 = smov 8  }
  0x31   : > { %1360 = dma.hbm_to_vmem [thread:$0]  (!%p1705_p11), %s1998_s2, 256, %s1698_s15, [#allocation9], %s1596_s14, %s1596_s14, %s1597_s20  }
  0x32   : > { %p32_p1 = scmp.eq.s32.totalorder %s31_s19, 0  ;;  %p41_p2 = scmp.ne.s32.totalorder %s1589_s29, %s1585_s28 }
  0x33   : > { %p42_p4 = scmp.eq.s32.totalorder %s1593_s30, 0  ;;  %p1373_p6 = scmp.lt.s32.totalorder %s1593_s30, 2 }
  0x34   : > { %s1741_s23 = scalar_select %p32_p1, %s1589_s29, %s34_s18  }
  0x35   : > { %p43_p8 = por %p42_p4, %p41_p2  ;;  %p2000_p10 = scmp.eq.s32.totalorder %s1675_s9, 1 }
  0x36   : > { %1999 = sst [smem:[#allocation17_spill]] %s1741_s23  ;;  %s1750_s25 = sand.u32 1, %s1589_s29  }
  0x37   : > { %p1745_p12 = por %p2000_p10, %p41_p2  ;;  %s1243_s16 = sshll.u32 %s1593_s30, 6 }
  0x38   : > { %s1242_s26 = sshll.u32 %s1750_s25, 2  ;;  %s2002_s0 = sld [smem:[#allocation18_spill]] }
  0x39   : > { %s2001_s24 = scalar_select %p1745_p12, 1, 0 }
  0x3a   : > { %s281_s18 = scalar_lea.vmem [#allocation5], %s1242_s26  ;;  %p1759_p11 = pnand %p1373_p6, %p43_p8 }
  0x3b   : > { %s288_s14 = sshll.u32 %s281_s18, 4  ;;  %s278_s22 = scalar_lea.sflag [#allocation6], %s1750_s25  ;;  %s1763_s14 = int_to_ptr.vmem [resolvable:$true] %s288_s14 }
  0x3c   : > { %p1461_p0 = pneg %p1759_p11 }
  0x3e   : > { %s1757_s19 = scalar_lea.hbm %s2002_s0, %s1243_s16  ;;  %s1464_s15 = scalar_lea.hbm %s2002_s0, 128 }
  0x3f   : > { %s1459_s2 = scalar_lea.hbm %s1757_s19, 64  ;;  %p1465_p7 = scmp.lt.u32.totalorder %s1757_s19, %s2002_s0 }
  0x40   : > { %p1460_p13 = scmp.ne.s32.totalorder %s1757_s19, %s1459_s2  ;;  %p1466_p9 = scmp.lt.u32.totalorder %s1464_s15, %s1459_s2 }
  0x41   : > { %p1468_p2 = scmp.lt.u32.totalorder %s1459_s2, %s1757_s19 }
  0x42   : > { %p1462_p3 = pnand %p1461_p0, %p1460_p13  ;;  %p1467_p1 = por %p1466_p9, %p1465_p7 }
  0x44   : > { %p1463_p5 = pneg %p1462_p3  ;;  %p1469_p4 = por %p1468_p2, %p1467_p1 }
  0x46   : > { %p1470_p6 = pnand %p1469_p4, %p1463_p5 }
  0x48   : > { %1473 = shalt.err (!%p1470_p6)
}
  0x49   : > { %s1474_s21 = scalar_lea.vmem %s1763_s14, 64  ;;  %s1598_s16 = smov [#allocation5]  }
  0x4a   : > { %p1475_p8 = scmp.ne.s32.totalorder %s1763_s14, %s1474_s21  ;;  %s1479_s26 = sshll.u32 %s1598_s16, 4  ;;  %s1480_s26 = int_to_ptr.vmem [resolvable:$false] %s1479_s26 }
  0x4b   : > { %s1481_s10 = scalar_lea.vmem %s1480_s26, 128  ;;  %p1482_p3 = scmp.lt.s32.totalorder %s1763_s14, %s1480_s26 }
  0x4c   : > { %p1477_p10 = pnand %p1475_p8, %p1461_p0  ;;  %p1483_p7 = scmp.lt.s32.totalorder %s1481_s10, %s1474_s21 }
  0x4e   : > { %p1478_p13 = pneg %p1477_p10  ;;  %p1484_p9 = por %p1483_p7, %p1482_p3 }
  0x50   : > { %p1485_p1 = pnand %p1484_p9, %p1478_p13 }
  0x52   : > { %1488 = shalt.err (!%p1485_p1)
}
  0x53   : > { %1364 = dma.hbm_to_vmem [thread:$0]  (!%p1759_p11), %s1757_s19, 64, %s1763_s14, %s278_s22  }
  0x54   : > { %s1244_s2 = sshll.u32 %s1750_s25, 3  ;;  %s1245_s15 = sshll.u32 %s1593_s30, 7 }
  0x55   : > { %s1797_s0 = scalar_lea.hbm %s1978_s1, %s1245_s15  ;;  %s299_s21 = scalar_lea.vmem [#allocation8], %s1244_s2 }
  0x56   : > { %s306_s26 = sshll.u32 %s299_s21, 4  ;;  %s2004_s10 = sand.u32 1, %s1593_s30   ;;  %s307_s26 = int_to_ptr.vmem [resolvable:$true] %s306_s26 }
  0x57   : > { %s296_s23 = scalar_lea.sflag [#allocation9], %s2004_s10  ;;  %s1489_s29 = scalar_lea.hbm %s1797_s0, 128 }
  0x58   : > { %p1490_p5 = scmp.ne.s32.totalorder %s1797_s0, %s1489_s29  ;;  %s1494_s14 = scalar_lea.hbm %s1978_s1, 256 }
  0x59   : > { %p1495_p6 = scmp.lt.u32.totalorder %s1797_s0, %s1978_s1  ;;  %p1496_p8 = scmp.lt.u32.totalorder %s1494_s14, %s1489_s29 }
  0x5a   : > { %p1492_p2 = pnand %p1490_p5, %p1461_p0  ;;  %p1498_p13 = scmp.lt.u32.totalorder %s1489_s29, %s1797_s0 }
  0x5b   : > { %p1497_p10 = por %p1496_p8, %p1495_p6 }
  0x5c   : > { %p1493_p4 = pneg %p1492_p2 }
  0x5d   : > { %p1499_p3 = por %p1498_p13, %p1497_p10 }
  0x5f   : > { %p1500_p7 = pnand %p1499_p3, %p1493_p4 }
  0x61   : > { %1503 = shalt.err (!%p1500_p7)
}
  0x62   : > { %s1504_s2 = scalar_lea.vmem %s307_s26, 128  ;;  %s1599_s18 = smov [#allocation8]  }
  0x63   : > { %p1505_p9 = scmp.ne.s32.totalorder %s307_s26, %s1504_s2  ;;  %s1509_s16 = sshll.u32 %s1599_s18, 4  ;;  %s1510_s16 = int_to_ptr.vmem [resolvable:$false] %s1509_s16 }
  0x64   : > { %s1511_s21 = scalar_lea.vmem %s1510_s16, 256  ;;  %p1512_p2 = scmp.lt.s32.totalorder %s307_s26, %s1510_s16 }
  0x65   : > { %p1507_p1 = pnand %p1505_p9, %p1461_p0  ;;  %p1513_p12 = scmp.lt.s32.totalorder %s1511_s21, %s1504_s2 }
  0x67   : > { %p1508_p5 = pneg %p1507_p1  ;;  %p1514_p6 = por %p1513_p12, %p1512_p2 }
  0x69   : > { %p1515_p8 = pnand %p1514_p6, %p1508_p5 }
  0x6b   : > { %1518 = shalt.err (!%p1515_p8)
}
  0x6c   : > { %1367 = dma.hbm_to_vmem [thread:$0]  (!%p1759_p11), %s1797_s0, 128, %s307_s26, %s296_s23  }
  0x6d   : > { %p2005_p4 = scmp.ne.s32.totalorder %s1996_s13, 0 }
  0x6e   : > { %s1823_s29 = sand.u32 (!%p2005_p4), 1, %s1585_s28   ;;  %p2006_p12 = scmp.ne.s32.totalorder (!%p2005_p4), %s1994_s11, 0 }
  0x6f   : > { %315 = sbr.rel (%p2005_p4) target bundleno = 1552 (0x610), region = 52  ;;  %s1247_s10 = sshll.u32 (!%p2005_p4), %s1823_s29, 2 }
  0x70   : > { %s318_s25 = scalar_lea.sflag (!%p2005_p4), [#allocation6], %s1823_s29  ;;  %s1827_s19 = scalar_lea.vmem (!%p2005_p4), [#allocation5], %s1247_s10 }
  0x76   : > { %1564 = dma.done.wait (%p2006_p12), %s318_s25, 64  }
  0x77   : > { %1566 = vsyncadd (%p2006_p12), %s318_s25, 4294967232  ;;  %s326_s0 = sand.u32 1, %s1675_s9   ;;  %s1248_s13 = sshll.u32 %s1823_s29, 3 }
  0x78   : > { %s327_s23 = scalar_lea.sflag [#allocation9], %s326_s0  ;;  %s330_s20 = scalar_lea.vmem [#allocation8], %s1248_s13 }
  0x79   : > { %1568 = dma.done.wait (%p2006_p12), %s327_s23, 128  }
  0x7a   : > { %1570 = vsyncadd (%p2006_p12), %s327_s23, 4294967168  ;;  %p2007_p11 = scmp.eq.s32.totalorder %s1675_s9, 0 }
  0x7c   : > { %1572 = dma.done.wait (%p2007_p11), [#allocation9], 256   ;;  %p2008_p0 = pmov %p2007_p11 }
  0x7d   : > { %v1600_v0 = vmov 0.0   ;;  %vm1601_vm0 = vmmov 0   ;;  %v389_v1 = vld [vmem:[%s330_s20] sm:$0xff]  ;;  %v422_v2 = vld [vmem:[#allocation10] sm:$0xff]  ;;  %v498_v3 = vld [vmem:[#allocation10 + $0x8] sm:$0xff]  ;;  %vm423_vm1 = vcmask 64512  }
  0x7e   : > { %1574 = vsyncadd (%p2008_p0), [#allocation9], 4294967040  ;;  %1289 = vmatprep.subr.mxu0 %v1600_v0  ;;  %1294 = vmatprep.subr.mxu1 %v1600_v0  ;;  %v1602_v5 = vmov 0   ;;  %v606_v6 = vld [vmem:[%s1980_s3] sm:$0xff]  ;;  %vm372_vm2 = vcmask 7168   ;;  %vm376_vm3 = vcmask 146568  }
  0x7f   : > { %1291 = vmatprep.mubr.msk.f32.mxu0 %vm1601_vm0, %v1600_v0  ;;  %1296 = vmatprep.mubr.msk.f32.mxu1 %vm1601_vm0, %v1600_v0  ;;  %373 = vst.msk [vmem:[#allocation2] sm:$0xff] %vm372_vm2, %v1600_v0  ;;  %380 = vst.msk [vmem:[#allocation3] sm:$0xff] %vm372_vm2, %v1600_v0  ;;  %vm374_vm4 = vcmask 3072   ;;  %vm378_vm5 = vcmask 142472   ;;  %v382_v13 = vld [vmem:[%s1827_s19] sm:$0xf] }
  0x80   : > { %390 = vxpose.xlu0.b32.start.end [1/1] (short) (narrow) %v389_v1, 8  ;;  %1290 = vmatpush3.msra.mxu0 %v422_v2  ;;  %377 = vst.msk [vmem:[#allocation2] sm:$0xff] %vm376_vm3, %v1600_v0  ;;  %381 = vst.msk [vmem:[#allocation3] sm:$0xff] %vm376_vm3, %v1600_v0  ;;  %s1603_s14 = smov 1   ;;  %v1604_v14 = vmov 0.0|0.0   ;;  %vm387_vm6 = vcmask 134152  }
  0x81   : > { %1295 = vmatpush3.msra.mxu1 %v498_v3  ;;  %375 = vst.msk [vmem:[#allocation2 + $0x8] sm:$0xf] %vm374_vm4, %v1600_v0  ;;  %1335 = vmatprep.subr.bf16.mxu0 %v1604_v14  ;;  %vm617_vm7 = vcmask 138248   ;;  %vm635_vm8 = vcmask 1043456   ;;  %vm1605_vm9 = vmmov 1   ;;  %s1606_s22 = smov 126  }
  0x82   : > { %379 = vst.msk [vmem:[#allocation2 + $0x8] sm:$0xf] %vm378_vm5, %v1600_v0  ;;  %1339 = vmatprep.subr.bf16.mxu1 %v1604_v14  ;;  %vm1870_vm10 = vmpackc.low %vm635_vm8, %vm1605_vm9  ;;  %s1607_s15 = smov 127   ;;  %vm631_vm11 = vcmask 97280   ;;  %v619_v25 = vld [vmem:[%s1981_s4] sm:$0xff]  ;;  %v1253_v34 = vld [vmem:[%s1981_s4 + $0x8] sm:$0xff] }
  0x83   : > { %v866_v26 = vld [vmem:[%s1982_s5] sm:$0xff]  ;;  %v1258_v36 = vld [vmem:[%s1981_s4 + $0x10] sm:$0xff]  ;;  %v1261_v52 = vld [vmem:[%s1983_s6 + $0x8] sm:$0xff]  ;;  %s1267_s18 = sshll.u32 %s1675_s9, 7  ;;  %s371_s16 = scalar_lea.vmem [#allocation11], %s1248_s13  ;;  %vm1120_vm12 = vcmask 130048  }
  0x84   : > { %v879_v50 = vld [vmem:[%s1983_s6] sm:$0xff]  ;;  %v1264_v55 = vld [vmem:[%s1983_s6 + $0x10] sm:$0xff]  ;;  %s1136_s21 = sshll.u32 %s371_s16, 4  ;;  %s1933_s19 = scalar_lea.hbm %s1985_s8, %s1267_s18  ;;  %s1935_s21 = int_to_ptr.vmem [resolvable:$true] %s1136_s21 }
  0x85   : > { %v1112_v51 = vld [vmem:[%s1984_s7] sm:$0xff]  ;;  %s1123_s0 = scalar_lea.sflag [#allocation7], %s1823_s29  ;;  %s1519_s23 = scalar_lea.vmem %s1935_s21, 128 }
  0x86   : > { %p1520_p10 = scmp.ne.s32.totalorder %s1935_s21, %s1519_s23  ;;  %p2011_p13 = scmp.ne.s32.totalorder %s2001_s24, 0 }
  0x87   : > { %s1608_s9 = smov [#allocation11]  }
  0x88   : > { %p1521_p3 = pnand %p1520_p10, %p2011_p13  ;;  %s1523_s13 = sshll.u32 %s1608_s9, 4  ;;  %s1524_s13 = int_to_ptr.vmem [resolvable:$false] %s1523_s13 }
  0x89   : > { %s1525_s20 = scalar_lea.vmem %s1524_s13, 256  ;;  %p1526_p9 = scmp.lt.s32.totalorder %s1935_s21, %s1524_s13 }
  0x8a   : > { %p1522_p7 = pneg %p1521_p3  ;;  %p1527_p1 = scmp.lt.s32.totalorder %s1525_s20, %s1519_s23 }
  0x8c   : > { %p1528_p5 = por %p1527_p1, %p1526_p9 }
  0x8e   : > { %p1529_p2 = pnand %p1528_p5, %p1522_p7 }
  0xa9   : > { %1419 = vset.pattern.permute.xlu0 %v1602_v5 }
  0xaa   : > { %609 = vperm.xlu0 %1419, %v606_v6  }
 0x100   : > { %v406_v4 = vpop.trf.xlu0 }
 0x101   : > { %1292 = vmatmul.mubr.msk.f32.vlgmr.msra.gmra.mrb[0].mxu0 %vm423_vm1, %v406_v4  ;;  %1297 = vmatmul.mubr.msk.f32.vlgmr.msra.gmra.mrb[0].mxu1 %vm423_vm1, %v406_v4 }
 0x102   : > { %1303 = vmatprep.mubr.msk.f32.mxu0 %vm1601_vm0, %v1600_v0  ;;  %1310 = vmatprep.mubr.msk.f32.mxu1 %vm1601_vm0, %v1600_v0 }
 0x129   : > { %v610_v15 = vpop.permute.xlu0 %609 }
 0x1d4   : > { %v493_v7 = vpop.f32.mrb[0].mxu0  ;;  %v565_v8 = vpop.f32.mrb[0].mxu1 }
 0x1d5   : > { %569 = vst [vmem:[#allocation4] ss:$2 sm:$0xff] %v493_v7  ;;  %571 = vst [vmem:[#allocation4 + $0x1] ss:$2 sm:$0xff] %v565_v8  ;;  %v1293_v9 = vpop.f32.mrb[1].mxu0  ;;  %v1298_v10 = vpop.f32.mrb[1].mxu1 }
 0x1dc   : > { %v572_v11 = vld [vmem:[#allocation4] sm:$0xff]  ;;  %v573_v12 = vld [vmem:[#allocation4 + $0x8] sm:$0xff] }
 0x1dd   : > { %574 = vxpose.xlu1.b32.start [1/2] (short) (narrow) %v572_v11, 8 }
 0x1e1   : > { %575 = vxpose.xlu1.b32.end [2/2] (short) (narrow) %v573_v12, 8 }
 0x1ff   : > { %384 = vrot.lane.b32.xlu1 %v382_v13, %s1603_s14 }
 0x200   : > { %1430 = vset.pattern.permute.xlu1 %v1602_v5 }
 0x25d   : > { %v590_v16 = vpop.trf.xlu1 }
 0x25e   : > { %v612_v17 = vadd.f32 %v610_v15, %v590_v16 }
 0x260   : > { %614 = vrot.lane.b32.xlu1 %v612_v17, %s1603_s14 }
 0x271   : > { %v385_v18 = vpop.permute.xlu1 %384 }
 0x272   : > { %388 = vst.msk [vmem:[#allocation2] sm:$0xf] %vm387_vm6, %v385_v18 }
 0x2d2   : > { %v615_v19 = vpop.permute.xlu1 %614 }
 0x2d3   : > { %618 = vst.msk [vmem:[#allocation2 + $0x4] sm:$0xff] %vm617_vm7, %v615_v19 }
 0x2da   : > { %v620_v20 = vld [vmem:[#allocation2] sm:$0xff]  ;;  %v621_v21 = vld [vmem:[#allocation2 + $0x8] sm:$0xf] }
 0x2db   : > { %v1425_v22 = vpack.i.bf16 %v621_v21, %v620_v20  ;;  %v1340_v23 = vpack.c.bf16 %v621_v21, %v620_v20 }
 0x2dd   : > { %1426 = vrot.lane.b32.xlu0 %v1425_v22, %s1606_s22  ;;  %1421 = vrot.lane.b32.xlu1 %v1425_v22, %s1607_s15 }
 0x2de   : > { %1342 = vmatpush3.bf16.msk.msra.mxu1 %vm1870_vm10, %v1340_v23 }
 0x2df   : > { %1320 = vmatprep.subr.mxu1 %v1600_v0 }
 0x2e1   : > { %1311 = vmatmul.mubr.msk.f32.vlgmr.msra.gmra.mrb[2].mxu1 %vm631_vm11, %v619_v25  ;;  %869 = vperm.xlu1 %1430, %v866_v26  }
 0x2e2   : > { %1322 = vmatprep.mubr.msk.f32.mxu1 %vm1601_vm0, %v1600_v0 }
 0x34f   : > { %v1427_v27 = vpop.permute.xlu0 %1426  ;;  %v1422_v28 = vpop.permute.xlu1 %1421 }
 0x350   : > { %v1424_v29 = vunpack.i.h.bf16 %v1422_v28  ;;  %v1423_v30 = vunpack.i.l.bf16 %v1422_v28  ;;  %v1429_v31 = vunpack.i.h.bf16 %v1427_v27  ;;  %v1428_v32 = vunpack.i.l.bf16 %v1427_v27 }
 0x352   : > { %v1336_v33 = vpack.c.bf16 %v1424_v29, %v1423_v30  ;;  %v1344_v35 = vpack.c.bf16 %v1429_v31, %v1428_v32 }
 0x354   : > { %1338 = vmatpush3.bf16.msk.msra.mxu0 %vm1870_vm10, %v1336_v33 }
 0x355   : > { %1343 = vmatprep.subr.bf16.mxu0 %v1604_v14 }
 0x357   : > { %1304 = vmatmul.mubr.msk.f32.vlgmr.msra.gmra.mrb[2].mxu0 %vm631_vm11, %v1253_v34 }
 0x358   : > { %1346 = vmatpush3.bf16.msk.msra.mxu0 %vm1870_vm10, %v1344_v35  ;;  %1317 = vmatprep.mubr.msk.f32.mxu0 %vm1601_vm0, %v1600_v0 }
 0x359   : > { %1325 = vmatprep.subr.mxu0 %v1600_v0 }
 0x35b   : > { %1318 = vmatmul.mubr.msk.f32.vlgmr.msra.gmra.mrb[4].mxu0 %vm631_vm11, %v1258_v36 }
 0x35c   : > { %1327 = vmatprep.mubr.msk.f32.mxu0 %vm1601_vm0, %v1600_v0 }
 0x360   : > { %v870_v43 = vpop.permute.xlu1 %869 }
 0x3b4   : > { %v779_v37 = vpop.f32.mrb[2].mxu1 }
 0x3b5   : > { %v1312_v38 = vpop.f32.mrb[3].mxu1 }
 0x42a   : > { %v704_v39 = vpop.f32.mrb[2].mxu0 }
 0x42b   : > { %v780_v40 = vadd.f32 %v779_v37, %v704_v39  ;;  %v1305_v41 = vpop.f32.mrb[3].mxu0 }
 0x42e   : > { %v861_v42 = vpop.f32.mrb[4].mxu0 }
 0x42f   : > { %v865_v44 = vadd.f32 %v861_v42, %v780_v40  ;;  %v1319_v45 = vpop.f32.mrb[5].mxu0 }
 0x431   : > { %v872_v46 = vadd.f32 %v870_v43, %v865_v44 }
 0x433   : > { %v873_v47 = vmax.f32 %v872_v46, 0.0 }
 0x435   : > { %875 = vrot.lane.b32.xlu0 %v873_v47, %s1603_s14 }
 0x4a7   : > { %v876_v48 = vpop.permute.xlu0 %875 }
 0x4a8   : > { %878 = vst.msk [vmem:[#allocation3] sm:$0xff] %vm617_vm7, %v876_v48 }
 0x4af   : > { %v880_v49 = vld [vmem:[#allocation3] sm:$0xff] }
 0x4b0   : > { %1035 = vrot.lane.b32.xlu0 %v880_v49, %s1606_s22  ;;  %884 = vrot.lane.b32.xlu1 %v880_v49, %s1607_s15 }
 0x4b1   : > { %1326 = vmatpush3.msra.mxu0 %v880_v49 }
 0x4b2   : > { %1328 = vmatmul.mubr.msk.f32.vlgmr.msra.gmra.mrb[6].mxu0 %vm423_vm1, %v879_v50 }
 0x4b4   : > { %1115 = vperm.xlu1 %1430, %v1112_v51  }
 0x522   : > { %v885_v53 = vpop.permute.xlu1 %884  ;;  %v1036_v54 = vpop.permute.xlu0 %1035 }
 0x523   : > { %1321 = vmatpush3.msra.mxu1 %v885_v53 }
 0x524   : > { %1323 = vmatmul.mubr.msk.f32.vlgmr.msra.gmra.mrb[4].mxu1 %vm423_vm1, %v1261_v52  ;;  %1330 = vmatprep.subr.mxu1 %v1600_v0 }
 0x525   : > { %1331 = vmatpush3.msra.mxu1 %v1036_v54  ;;  %1332 = vmatprep.mubr.msk.f32.mxu1 %vm1601_vm0, %v1600_v0 }
 0x528   : > { %1333 = vmatmul.mubr.msk.f32.vlgmr.msra.gmra.mrb[6].mxu1 %vm423_vm1, %v1264_v55 }
 0x533   : > { %v1116_v1 = vpop.permute.xlu1 %1115 }
 0x585   : > { %v1029_v56 = vpop.f32.mrb[6].mxu0 }
 0x586   : > { %v1329_v57 = vpop.f32.mrb[7].mxu0 }
 0x5f7   : > { %v956_v58 = vpop.f32.mrb[4].mxu1 }
 0x5f8   : > { %v1030_v59 = vadd.f32 %v1029_v56, %v956_v58  ;;  %v1324_v60 = vpop.f32.mrb[5].mxu1 }
 0x5fb   : > { %v1107_v61 = vpop.f32.mrb[6].mxu1 }
 0x5fc   : > { %v1111_v62 = vadd.f32 %v1107_v61, %v1030_v59  ;;  %v1334_v63 = vpop.f32.mrb[7].mxu1 }
 0x5fe   : > { %v1118_v0 = vadd.f32 %v1116_v1, %v1111_v62 }
 0x600   : > { %v1119_v2 = vmax.f32 %v1118_v0, 0.0 }
 0x602   : > { %1121 = vst.msk [vmem:[%s371_s16] sm:$0xff] %vm1120_vm12, %v1119_v2 }
 0x603   : > { %1532 = shalt.err (!%p1529_p2)
}
 0x604   : > { %s1533_s29 = scalar_lea.hbm %s1933_s19, 128  ;;  %s1537_s14 = scalar_lea.hbm %s1985_s8, 256 }
 0x605   : > { %p1534_p6 = scmp.ne.s32.totalorder %s1933_s19, %s1533_s29  ;;  %p1538_p12 = scmp.lt.u32.totalorder %s1933_s19, %s1985_s8 }
 0x606   : > { %p1539_p11 = scmp.lt.u32.totalorder %s1537_s14, %s1533_s29  ;;  %p1541_p10 = scmp.lt.u32.totalorder %s1533_s29, %s1933_s19 }
 0x607   : > { %p1535_p8 = pnand %p1534_p6, %p2011_p13 }
 0x608   : > { %p1540_p0 = por %p1539_p11, %p1538_p12 }
 0x609   : > { %p1536_p4 = pneg %p1535_p8 }
 0x60a   : > { %p1542_p3 = por %p1541_p10, %p1540_p0 }
 0x60c   : > { %p1543_p7 = pnand %p1542_p3, %p1536_p4 }
 0x60e   : > { %1546 = shalt.err (!%p1543_p7)
}
 0x60f   : > { %1355 = dma.vmem_to_hbm [thread:$0]  (%p2011_p13), %s1935_s21, 128, %s1933_s19, %s1123_s0  }
 0x610 PF: > { %s1148_s15 = sand.u32 1, %s1581_s27   ;;  %p2012_p9 = scmp.ne.s32.totalorder %s1995_s12, 0 }
 0x611   : > { %p2013_p1 = scmp.ge.s32.totalorder %s1593_s30, 2  ;;  %s1149_s18 = scalar_lea.sflag [#allocation7], %s1148_s15 }
 0x613   : > { %p1369_p5 = pnand %p2013_p1, %p2012_p9 }
 0x615   : > { %1576 = dma.done.wait (!%p1369_p5), %s1149_s18, 128  }
 0x616   : > { %1578 = vsyncadd (!%p1369_p5), %s1149_s18, 4294967168  ;;  %s2014_s16 = sld [smem:[#allocation16_spill]]  ;;  %s2015_s29 = sld [smem:[#allocation17_spill]] }
 0x617   : > { %p24_p2 = scmp.ge.s32.totalorder %s1710_s17, 4   ;;  %s2016_s27 = smov %s1585_s28 }
 0x618   : > { %s2018_s30 = smov %s1710_s17 }
 0x619   :  { %26 = sbr.rel (!%p24_p2) target bundleno = 10 (0xa), region = 120 }
 0x61c   : > { %s2017_s28 = smov %s2014_s16 }
 0x620   :  { %1154 = vsyncpa [#allocation6], 1 }
 0x621   :  { %1156 = vsyncpa [#allocation6 + $0x1], 1 }
 0x622   :  { %1157 = vsyncpa [#allocation9], 1 }
 0x623   :  { %1159 = vsyncpa [#allocation9 + $0x1], 1 }
 0x624   :  { %1160 = vsyncpa [#allocation7], 1 }
 0x625   :  { %1162 = vsyncpa [#allocation7 + $0x1], 1 }

// kernel: tpu_custom_call.1
= control target key start
LH: loop header
LB: loop body
LE: loop exit
PB: predicated region body
PF: predicated region fallthrough
CT: control target
= control target key end

     0   :  { %s2174_s0 = inlined_call_operand.hbm [shape: f32[2,4,16], index: 0, kind: input, shape index: {}]   ;;  %s2175_s1 = inlined_call_operand.hbm [shape: f32[2,8,8], index: 1, kind: input, shape index: {}]   ;;  %s2176_s2 = inlined_call_operand.hbm [shape: f32[2,8,8], index: 2, kind: input, shape index: {}]   ;;  %s2177_s3 = inlined_call_operand.vmem [shape: f32[8,1], index: 3, kind: input, shape index: {}]   ;;  %s2178_s4 = inlined_call_operand.vmem [shape: f32[3,8,12], index: 4, kind: input, shape index: {}]   ;;  %s2179_s5 = inlined_call_operand.vmem [shape: f32[8,1], index: 5, kind: input, shape index: {}]   ;;  %s2180_s6 = inlined_call_operand.vmem [shape: f32[3,8,8], index: 6, kind: input, shape index: {}]   ;;  %s2181_s7 = inlined_call_operand.vmem [shape: f32[8,1], index: 7, kind: input, shape index: {}]   ;;  %s2182_s8 = inlined_call_operand.hbm [shape: f32[2,8,16], index: 8, kind: output, shape index: {}]  }
   0x1   :  { %2188 = sst [smem:[#allocation18_spill]] %s2174_s0 }
   0x2   :  { %2189 = sst [smem:[#allocation19_spill]] %s2176_s2 }
   0x3   :  { %13 = vsyncpa [#allocation6], 0 }
   0x4   :  { %15 = vsyncpa [#allocation6 + $0x1], 0 }
   0x5   :  { %16 = vsyncpa [#allocation9], 0 }
   0x6   :  { %18 = vsyncpa [#allocation9 + $0x1], 0 }
   0x7   :  { %19 = vsyncpa [#allocation7], 0 }
   0x8   :  { %21 = vsyncpa [#allocation7 + $0x1], 0  ;;  %s1856_s27 = smov 0   ;;  %s1858_s28 = smov 0  }
   0x9   :  { %s1860_s29 = smov 0   ;;  %s1862_s30 = smov 0  }
   0xa LB: > { %2190 = sst [smem:[#allocation16_spill]] %s1791_s29  ;;  %s1877_s9 = sadd.s32 4294967295, %s1795_s30   ;;  %s1795_s30 = sphi %s1862_s30, %s2213_s30   ;;  %s1791_s29 = sphi %s1860_s29, %s2210_s29   ;;  %s1787_s28 = sphi %s1858_s28, %s2212_s28   ;;  %s1783_s27 = sphi %s1856_s27, %s2211_s27  }
   0xb   : > { %s1414_s10 = sadd.s32 4294967294, %s1795_s30   ;;  %p47_p0 = scmp.ne.s32.totalorder %s1787_s28, %s1783_s27 }
   0xc   : > { %p2183_p1 = scmp.eq.s32.totalorder %s1877_s9, 0  ;;  %p229_p3 = scmp.eq.s32.totalorder %s1414_s10, 1 }
   0xd   : > { %p1415_p5 = scmp.ge.s32.totalorder %s1795_s30, 1  ;;  %p236_p7 = scmp.lt.s32.totalorder %s1795_s30, 3 }
   0xe   : > { %p1886_p4 = por %p2183_p1, %p47_p0  ;;  %p1891_p6 = por %p229_p3, %p47_p0 }
   0xf   : > { %p1896_p8 = pnand %p1415_p5, %p236_p7  ;;  %s1797_s14 = smov [#allocation10]  }
  0x10   : > { %s2191_s11 = scalar_select %p1886_p4, 1, 0 }
  0x11   : > { %s2192_s12 = scalar_select %p1891_p6, 1, 0 }
  0x12   : > { %s2193_s13 = scalar_select %p1896_p8, 1, 0 }
  0x13   : > { %s248_s15 = sshll.u32 %s1797_s14, 4  ;;  %p1559_p9 = pneg %p1896_p8  ;;  %s1900_s15 = int_to_ptr.vmem [resolvable:$true] %s248_s15 }
  0x14   : > { %s1912_s17 = sadd.s32 1, %s1795_s30   ;;  %s34_s18 = sadd.s32 1, %s1791_s29 }
  0x15   : > { %p1907_p11 = pnand %p1559_p9, %p2183_p1  ;;  %s31_s19 = ssub.s32 %s1795_s30, %s1912_s17 }
  0x16   : > { %s2195_s2 = sld [smem:[#allocation19_spill]] }
  0x17   : > { %p1635_p13 = pneg %p1907_p11 }
  0x1c   : > { %s1633_s22 = scalar_lea.hbm %s2195_s2, 256 }
  0x1d   : > { %p1634_p12 = scmp.ne.s32.totalorder %s2195_s2, %s1633_s22  ;;  %p1640_p5 = scmp.lt.u32.totalorder %s1633_s22, %s2195_s2 }
  0x1f   : > { %p1636_p0 = pnand %p1635_p13, %p1634_p12 }
  0x21   : > { %p1637_p3 = pneg %p1636_p0 }
  0x23   : > { %p1642_p7 = pnand %p1640_p5, %p1637_p3 }
  0x25   : > { %1645 = shalt.err (!%p1642_p7)
}
  0x26   : > { %s1646_s10 = scalar_lea.vmem %s1900_s15, 256  ;;  %p1654_p2 = scmp.lt.s32.totalorder %s1900_s15, %s1900_s15 }
  0x27   : > { %p1647_p9 = scmp.ne.s32.totalorder %s1900_s15, %s1646_s10  ;;  %p1655_p6 = scmp.lt.s32.totalorder %s1646_s10, %s1646_s10 }
  0x29   : > { %p1649_p10 = pnand %p1647_p9, %p1635_p13  ;;  %p1656_p4 = por %p1655_p6, %p1654_p2 }
  0x2b   : > { %p1650_p1 = pneg %p1649_p10 }
  0x2d   : > { %p1657_p8 = pnand %p1656_p4, %p1650_p1 }
  0x2f   : > { %1660 = shalt.err (!%p1657_p8)
}
  0x30   : > { %s1798_s14 = smov 128   ;;  %s1799_s20 = smov 8  }
  0x31   : > { %1562 = dma.hbm_to_vmem [thread:$0]  (!%p1907_p11), %s2195_s2, 256, %s1900_s15, [#allocation9], %s1798_s14, %s1798_s14, %s1799_s20  }
  0x32   : > { %p32_p1 = scmp.eq.s32.totalorder %s31_s19, 0  ;;  %p41_p2 = scmp.ne.s32.totalorder %s1791_s29, %s1787_s28 }
  0x33   : > { %p42_p4 = scmp.eq.s32.totalorder %s1795_s30, 0  ;;  %p1575_p6 = scmp.lt.s32.totalorder %s1795_s30, 2 }
  0x34   : > { %s1943_s23 = scalar_select %p32_p1, %s1791_s29, %s34_s18  }
  0x35   : > { %p43_p8 = por %p42_p4, %p41_p2  ;;  %p2197_p10 = scmp.eq.s32.totalorder %s1877_s9, 1 }
  0x36   : > { %2196 = sst [smem:[#allocation17_spill]] %s1943_s23  ;;  %s1952_s25 = sand.u32 1, %s1791_s29  }
  0x37   : > { %p1947_p12 = por %p2197_p10, %p41_p2  ;;  %s1419_s16 = sshll.u32 %s1795_s30, 6 }
  0x38   : > { %s1418_s26 = sshll.u32 %s1952_s25, 2  ;;  %s2199_s0 = sld [smem:[#allocation18_spill]] }
  0x39   : > { %s2198_s24 = scalar_select %p1947_p12, 1, 0 }
  0x3a   : > { %s281_s18 = scalar_lea.vmem [#allocation5], %s1418_s26  ;;  %p1961_p11 = pnand %p1575_p6, %p43_p8 }
  0x3b   : > { %s288_s14 = sshll.u32 %s281_s18, 4  ;;  %s278_s22 = scalar_lea.sflag [#allocation6], %s1952_s25  ;;  %s1965_s14 = int_to_ptr.vmem [resolvable:$true] %s288_s14 }
  0x3c   : > { %p1663_p0 = pneg %p1961_p11 }
  0x3e   : > { %s1959_s19 = scalar_lea.hbm %s2199_s0, %s1419_s16  ;;  %s1666_s15 = scalar_lea.hbm %s2199_s0, 128 }
  0x3f   : > { %s1661_s2 = scalar_lea.hbm %s1959_s19, 64  ;;  %p1667_p7 = scmp.lt.u32.totalorder %s1959_s19, %s2199_s0 }
  0x40   : > { %p1662_p13 = scmp.ne.s32.totalorder %s1959_s19, %s1661_s2  ;;  %p1668_p9 = scmp.lt.u32.totalorder %s1666_s15, %s1661_s2 }
  0x41   : > { %p1670_p2 = scmp.lt.u32.totalorder %s1661_s2, %s1959_s19 }
  0x42   : > { %p1664_p3 = pnand %p1663_p0, %p1662_p13  ;;  %p1669_p1 = por %p1668_p9, %p1667_p7 }
  0x44   : > { %p1665_p5 = pneg %p1664_p3  ;;  %p1671_p4 = por %p1670_p2, %p1669_p1 }
  0x46   : > { %p1672_p6 = pnand %p1671_p4, %p1665_p5 }
  0x48   : > { %1675 = shalt.err (!%p1672_p6)
}
  0x49   : > { %s1676_s21 = scalar_lea.vmem %s1965_s14, 64  ;;  %s1800_s16 = smov [#allocation5]  }
  0x4a   : > { %p1677_p8 = scmp.ne.s32.totalorder %s1965_s14, %s1676_s21  ;;  %s1681_s26 = sshll.u32 %s1800_s16, 4  ;;  %s1682_s26 = int_to_ptr.vmem [resolvable:$false] %s1681_s26 }
  0x4b   : > { %s1683_s10 = scalar_lea.vmem %s1682_s26, 128  ;;  %p1684_p3 = scmp.lt.s32.totalorder %s1965_s14, %s1682_s26 }
  0x4c   : > { %p1679_p10 = pnand %p1677_p8, %p1663_p0  ;;  %p1685_p7 = scmp.lt.s32.totalorder %s1683_s10, %s1676_s21 }
  0x4e   : > { %p1680_p13 = pneg %p1679_p10  ;;  %p1686_p9 = por %p1685_p7, %p1684_p3 }
  0x50   : > { %p1687_p1 = pnand %p1686_p9, %p1680_p13 }
  0x52   : > { %1690 = shalt.err (!%p1687_p1)
}
  0x53   : > { %1566 = dma.hbm_to_vmem [thread:$0]  (!%p1961_p11), %s1959_s19, 64, %s1965_s14, %s278_s22  }
  0x54   : > { %s1420_s2 = sshll.u32 %s1952_s25, 3  ;;  %s1421_s15 = sshll.u32 %s1795_s30, 7 }
  0x55   : > { %s1999_s0 = scalar_lea.hbm %s2175_s1, %s1421_s15  ;;  %s299_s21 = scalar_lea.vmem [#allocation8], %s1420_s2 }
  0x56   : > { %s306_s26 = sshll.u32 %s299_s21, 4  ;;  %s2201_s10 = sand.u32 1, %s1795_s30   ;;  %s307_s26 = int_to_ptr.vmem [resolvable:$true] %s306_s26 }
  0x57   : > { %s296_s23 = scalar_lea.sflag [#allocation9], %s2201_s10  ;;  %s1691_s29 = scalar_lea.hbm %s1999_s0, 128 }
  0x58   : > { %p1692_p5 = scmp.ne.s32.totalorder %s1999_s0, %s1691_s29  ;;  %s1696_s14 = scalar_lea.hbm %s2175_s1, 256 }
  0x59   : > { %p1697_p6 = scmp.lt.u32.totalorder %s1999_s0, %s2175_s1  ;;  %p1698_p8 = scmp.lt.u32.totalorder %s1696_s14, %s1691_s29 }
  0x5a   : > { %p1694_p2 = pnand %p1692_p5, %p1663_p0  ;;  %p1700_p13 = scmp.lt.u32.totalorder %s1691_s29, %s1999_s0 }
  0x5b   : > { %p1699_p10 = por %p1698_p8, %p1697_p6 }
  0x5c   : > { %p1695_p4 = pneg %p1694_p2 }
  0x5d   : > { %p1701_p3 = por %p1700_p13, %p1699_p10 }
  0x5f   : > { %p1702_p7 = pnand %p1701_p3, %p1695_p4 }
  0x61   : > { %1705 = shalt.err (!%p1702_p7)
}
  0x62   : > { %s1706_s2 = scalar_lea.vmem %s307_s26, 128  ;;  %s1801_s18 = smov [#allocation8]  }
  0x63   : > { %p1707_p9 = scmp.ne.s32.totalorder %s307_s26, %s1706_s2  ;;  %s1711_s16 = sshll.u32 %s1801_s18, 4  ;;  %s1712_s16 = int_to_ptr.vmem [resolvable:$false] %s1711_s16 }
  0x64   : > { %s1713_s21 = scalar_lea.vmem %s1712_s16, 256  ;;  %p1714_p2 = scmp.lt.s32.totalorder %s307_s26, %s1712_s16 }
  0x65   : > { %p1709_p1 = pnand %p1707_p9, %p1663_p0  ;;  %p1715_p12 = scmp.lt.s32.totalorder %s1713_s21, %s1706_s2 }
  0x67   : > { %p1710_p5 = pneg %p1709_p1  ;;  %p1716_p6 = por %p1715_p12, %p1714_p2 }
  0x69   : > { %p1717_p8 = pnand %p1716_p6, %p1710_p5 }
  0x6b   : > { %1720 = shalt.err (!%p1717_p8)
}
  0x6c   : > { %1569 = dma.hbm_to_vmem [thread:$0]  (!%p1961_p11), %s1999_s0, 128, %s307_s26, %s296_s23  }
  0x6d   : > { %p2202_p4 = scmp.ne.s32.totalorder %s2193_s13, 0 }
  0x6e   : > { %s2025_s29 = sand.u32 (!%p2202_p4), 1, %s1787_s28   ;;  %p2203_p12 = scmp.ne.s32.totalorder (!%p2202_p4), %s2191_s11, 0 }
  0x6f   : > { %315 = sbr.rel (%p2202_p4) target bundleno = 1769 (0x6e9), region = 52  ;;  %s1423_s10 = sshll.u32 (!%p2202_p4), %s2025_s29, 2 }
  0x70   : > { %s318_s25 = scalar_lea.sflag (!%p2202_p4), [#allocation6], %s2025_s29  ;;  %s2029_s19 = scalar_lea.vmem (!%p2202_p4), [#allocation5], %s1423_s10 }
  0x76   : > { %1766 = dma.done.wait (%p2203_p12), %s318_s25, 64  }
  0x77   : > { %1768 = vsyncadd (%p2203_p12), %s318_s25, 4294967232  ;;  %s326_s0 = sand.u32 1, %s1877_s9   ;;  %s1424_s13 = sshll.u32 %s2025_s29, 3 }
  0x78   : > { %s327_s23 = scalar_lea.sflag [#allocation9], %s326_s0  ;;  %s330_s20 = scalar_lea.vmem [#allocation8], %s1424_s13 }
  0x79   : > { %1770 = dma.done.wait (%p2203_p12), %s327_s23, 128  }
  0x7a   : > { %1772 = vsyncadd (%p2203_p12), %s327_s23, 4294967168  ;;  %p2204_p11 = scmp.eq.s32.totalorder %s1877_s9, 0 }
  0x7c   : > { %1774 = dma.done.wait (%p2204_p11), [#allocation9], 256   ;;  %p2205_p0 = pmov %p2204_p11 }
  0x7d   : > { %v1802_v0 = vmov 0.0   ;;  %vm1803_vm0 = vmmov 0   ;;  %v389_v1 = vld [vmem:[%s330_s20] sm:$0xff]  ;;  %v422_v2 = vld [vmem:[#allocation10] sm:$0xff]  ;;  %v498_v3 = vld [vmem:[#allocation10 + $0x8] sm:$0xff]  ;;  %vm423_vm1 = vcmask 64512   ;;  %v569_v5 = vlaneseq }
  0x7e   : > { %1776 = vsyncadd (%p2205_p0), [#allocation9], 4294967040  ;;  %1479 = vmatprep.subr.mxu0 %v1802_v0  ;;  %1484 = vmatprep.subr.mxu1 %v1802_v0  ;;  %v1804_v19 = vmov 0   ;;  %v782_v20 = vld [vmem:[%s2177_s3] sm:$0xff]  ;;  %vm372_vm6 = vcmask 7168   ;;  %vm376_vm7 = vcmask 146568  }
  0x7f   : > { %1481 = vmatprep.mubr.msk.f32.mxu0 %vm1803_vm0, %v1802_v0  ;;  %1486 = vmatprep.mubr.msk.f32.mxu1 %vm1803_vm0, %v1802_v0  ;;  %v573_v6 = vand.u32 127, %v569_v5  ;;  %v570_v8 = vshrl.u32 %v569_v5, 7  ;;  %373 = vst.msk [vmem:[#allocation2] sm:$0xff] %vm372_vm6, %v1802_v0  ;;  %380 = vst.msk [vmem:[#allocation3] sm:$0xff] %vm372_vm6, %v1802_v0  ;;  %vm374_vm8 = vcmask 3072   ;;  %vm378_vm9 = vcmask 142472  }
  0x80   : > { %390 = vxpose.xlu0.b32.start.end [1/1] (short) (narrow) %v389_v1, 8  ;;  %1480 = vmatpush3.msra.mxu0 %v422_v2  ;;  %377 = vst.msk [vmem:[#allocation2] sm:$0xff] %vm376_vm7, %v1802_v0  ;;  %381 = vst.msk [vmem:[#allocation3] sm:$0xff] %vm376_vm7, %v1802_v0  ;;  %v382_v23 = vld [vmem:[%s2029_s19] sm:$0xf]  ;;  %s1805_s14 = smov 1  }
  0x81   : > { %1485 = vmatpush3.msra.mxu1 %v498_v3  ;;  %v574_v7 = vmul.u32 2, %v573_v6  ;;  %v571_v10 = vadd.s32 8, %v570_v8  ;;  %375 = vst.msk [vmem:[#allocation2 + $0x8] sm:$0xf] %vm374_vm8, %v1802_v0  ;;  %vm387_vm10 = vcmask 134152   ;;  %vm793_vm11 = vcmask 138248  }
  0x82   : > { %379 = vst.msk [vmem:[#allocation2 + $0x8] sm:$0xf] %vm378_vm9, %v1802_v0  ;;  %v1806_v29 = vmov 0.0|0.0   ;;  %s1807_s22 = smov 126   ;;  %s1808_s15 = smov 127   ;;  %v1042_v34 = vld [vmem:[%s2179_s5] sm:$0xff] }
  0x83   : > { %v581_v9 = vadd.s32 1, %v574_v7  ;;  %vm575_vm4 = vcmp.eq.s32.totalorder %v570_v8, %v574_v7  ;;  %vm576_vm5 = vcmp.eq.s32.totalorder %v571_v10, %v574_v7  ;;  %1535 = vmatprep.subr.bf16.mxu1 %v1806_v29  ;;  %vm811_vm12 = vcmask 1043456   ;;  %v1437_v43 = vld [vmem:[%s2178_s4 + $0x8] sm:$0xff]  ;;  %v1442_v44 = vld [vmem:[%s2178_s4 + $0x10] sm:$0xff]  ;;  %v795_v45 = vld [vmem:[%s2178_s4] sm:$0xff]  ;;  %s1451_s18 = sshll.u32 %s1877_s9, 7 }
  0x84   : > { %v1429_v17 = vsel %vm575_vm4, 1.0, %v1802_v0  ;;  %v1430_v18 = vsel %vm576_vm5, 1.0, %v1802_v0  ;;  %vm1809_vm13 = vmmov 1   ;;  %vm807_vm15 = vcmask 97280   ;;  %v1055_v59 = vld [vmem:[%s2180_s6] sm:$0xff]  ;;  %v1445_v61 = vld [vmem:[%s2180_s6 + $0x8] sm:$0xff]  ;;  %s2130_s19 = scalar_lea.hbm %s2182_s8, %s1451_s18 }
  0x85   : > { %vm582_vm2 = vcmp.eq.s32.totalorder %v570_v8, %v581_v9  ;;  %vm583_vm3 = vcmp.eq.s32.totalorder %v571_v10, %v581_v9  ;;  %vm1537_vm14 = vmpackc.low %vm811_vm12, %vm1809_vm13  ;;  %v1288_v60 = vld [vmem:[%s2181_s7] sm:$0xff]  ;;  %v1448_v1 = vld [vmem:[%s2180_s6 + $0x10] sm:$0xff]  ;;  %s371_s16 = scalar_lea.vmem [#allocation11], %s1424_s13  ;;  %s1299_s0 = scalar_lea.sflag [#allocation7], %s2025_s29 }
  0x86   : > { %v1431_v11 = vsel %vm582_vm2, 1.0, %v1802_v0  ;;  %v1432_v14 = vsel %vm583_vm3, 1.0, %v1802_v0  ;;  %s1312_s21 = sshll.u32 %s371_s16, 4  ;;  %p2206_p13 = scmp.ne.s32.totalorder %s2198_s24, 0  ;;  %s2132_s21 = int_to_ptr.vmem [resolvable:$true] %s1312_s21 }
  0x87   : > { %s1721_s23 = scalar_lea.vmem %s2132_s21, 128  ;;  %s1810_s9 = smov [#allocation11]  }
  0x88   : > { %p1722_p10 = scmp.ne.s32.totalorder %s2132_s21, %s1721_s23  ;;  %s1725_s13 = sshll.u32 %s1810_s9, 4  ;;  %s1726_s13 = int_to_ptr.vmem [resolvable:$false] %s1725_s13 }
  0x89   : > { %s1727_s20 = scalar_lea.vmem %s1726_s13, 256  ;;  %p1728_p9 = scmp.lt.s32.totalorder %s2132_s21, %s1726_s13 }
  0x8a   : > { %p1723_p3 = pnand %p1722_p10, %p2206_p13  ;;  %p1729_p1 = scmp.lt.s32.totalorder %s1727_s20, %s1721_s23 }
  0x8c   : > { %p1724_p7 = pneg %p1723_p3  ;;  %p1730_p5 = por %p1729_p1, %p1728_p9 }
  0x8e   : > { %p1731_p2 = pnand %p1730_p5, %p1724_p7 }
  0xa9   : > { %1621 = vset.pattern.permute.xlu0 %v1804_v19 }
  0xaa   : > { %785 = vperm.xlu0 %1621, %v782_v20  }
 0x100   : > { %v406_v4 = vpop.trf.xlu0 }
 0x101   : > { %1482 = vmatmul.mubr.msk.f32.vlgmr.msra.gmra.mrb[0].mxu0 %vm423_vm1, %v406_v4  ;;  %1487 = vmatmul.mubr.msk.f32.vlgmr.msra.gmra.mrb[0].mxu1 %vm423_vm1, %v406_v4 }
 0x102   : > { %1503 = vmatprep.mubr.msk.f32.mxu1 %vm1803_vm0, %v1802_v0  ;;  %1491 = vmatprep.mubr.msk.f32.mxu0 %vm423_vm1, %v1431_v11 }
 0x129   : > { %v786_v24 = vpop.permute.xlu0 %785 }
 0x1d4   : > { %v493_v12 = vpop.f32.mrb[0].mxu0  ;;  %v565_v13 = vpop.f32.mrb[0].mxu1 }
 0x1d5   : > { %v1483_v15 = vpop.f32.mrb[1].mxu0  ;;  %v1488_v16 = vpop.f32.mrb[1].mxu1  ;;  %1489 = vmatprep.subr.mxu0 %v565_v13 }
 0x1d6   : > { %1490 = vmatpush3.msra.mxu0 %v565_v13 }
 0x1d7   : > { %1492 = vmatmul.mubr.msk.f32.vlgmr.msra.gmra.mrb[2].mxu0 %vm423_vm1, %v1432_v14  ;;  %1494 = vmatprep.subr.mxu0 %v493_v12 }
 0x1d8   : > { %1495 = vmatpush3.msra.mxu0 %v493_v12  ;;  %1496 = vmatprep.mubr.msk.f32.mxu0 %vm423_vm1, %v1429_v17 }
 0x1d9   : > { %1543 = vmatprep.subr.bf16.mxu0 %v1806_v29 }
 0x1df   : > { %1497 = vmatmul.mubr.msk.f32.vlgmr.msra.gmra.mrb[2].mxu0 %vm423_vm1, %v1430_v18 }
 0x1e0   : > { %1517 = vmatprep.mubr.msk.f32.mxu0 %vm1803_vm0, %v1802_v0 }
 0x2b2   : > { %v1498_v21 = vpop.f32.mrb[2].mxu0 }
 0x2b3   : > { %v741_v22 = vpop.f32.mrb[3].mxu0 }
 0x2b4   : > { %750 = vxpose.xlu1.b32.start [1/2] (short) (narrow) %v741_v22, 8 }
 0x2b8   : > { %751 = vxpose.xlu1.b32.end [2/2] (short) (narrow) %v1498_v21, 8 }
 0x2d6   : > { %384 = vrot.lane.b32.xlu1 %v382_v23, %s1805_s14 }
 0x2d7   : > { %1632 = vset.pattern.permute.xlu1 %v1804_v19 }
 0x334   : > { %v766_v25 = vpop.trf.xlu1 }
 0x335   : > { %v788_v26 = vadd.f32 %v786_v24, %v766_v25 }
 0x337   : > { %790 = vrot.lane.b32.xlu1 %v788_v26, %s1805_s14 }
 0x348   : > { %v385_v27 = vpop.permute.xlu1 %384 }
 0x349   : > { %388 = vst.msk [vmem:[#allocation2] sm:$0xf] %vm387_vm10, %v385_v27 }
 0x3a9   : > { %v791_v28 = vpop.permute.xlu1 %790 }
 0x3aa   : > { %794 = vst.msk [vmem:[#allocation2 + $0x4] sm:$0xff] %vm793_vm11, %v791_v28 }
 0x3b1   : > { %v796_v30 = vld [vmem:[#allocation2] sm:$0xff]  ;;  %v797_v31 = vld [vmem:[#allocation2 + $0x8] sm:$0xf] }
 0x3b2   : > { %v1627_v32 = vpack.i.bf16 %v797_v31, %v796_v30  ;;  %v1540_v33 = vpack.c.bf16 %v797_v31, %v796_v30 }
 0x3b4   : > { %1628 = vrot.lane.b32.xlu0 %v1627_v32, %s1807_s22  ;;  %1623 = vrot.lane.b32.xlu1 %v1627_v32, %s1808_s15 }
 0x3b8   : > { %1045 = vperm.xlu1 %1632, %v1042_v34  }
 0x426   : > { %v1629_v35 = vpop.permute.xlu0 %1628  ;;  %v1624_v36 = vpop.permute.xlu1 %1623 }
 0x427   : > { %v1631_v37 = vunpack.i.h.bf16 %v1629_v35  ;;  %v1630_v38 = vunpack.i.l.bf16 %v1629_v35  ;;  %v1626_v39 = vunpack.i.h.bf16 %v1624_v36  ;;  %v1625_v40 = vunpack.i.l.bf16 %v1624_v36 }
 0x429   : > { %v1544_v41 = vpack.c.bf16 %v1631_v37, %v1630_v38  ;;  %v1536_v42 = vpack.c.bf16 %v1626_v39, %v1625_v40 }
 0x42b   : > { %1538 = vmatpush3.bf16.msk.msra.mxu1 %vm1537_vm14, %v1536_v42  ;;  %1546 = vmatpush3.bf16.msk.msra.mxu0 %vm1537_vm14, %v1544_v41 }
 0x42c   : > { %1539 = vmatprep.subr.bf16.mxu1 %v1806_v29  ;;  %1525 = vmatprep.subr.mxu0 %v1802_v0 }
 0x42e   : > { %1504 = vmatmul.mubr.msk.f32.vlgmr.msra.gmra.mrb[2].mxu1 %vm807_vm15, %v1437_v43  ;;  %1518 = vmatmul.mubr.msk.f32.vlgmr.msra.gmra.mrb[4].mxu0 %vm807_vm15, %v1442_v44 }
 0x42f   : > { %1542 = vmatpush3.bf16.msk.msra.mxu1 %vm1537_vm14, %v1540_v33  ;;  %1510 = vmatprep.mubr.msk.f32.mxu1 %vm1803_vm0, %v1802_v0 }
 0x430   : > { %1520 = vmatprep.subr.mxu1 %v1802_v0  ;;  %1527 = vmatprep.mubr.msk.f32.mxu0 %vm1803_vm0, %v1802_v0 }
 0x432   : > { %1511 = vmatmul.mubr.msk.f32.vlgmr.msra.gmra.mrb[4].mxu1 %vm807_vm15, %v795_v45 }
 0x433   : > { %1522 = vmatprep.mubr.msk.f32.mxu1 %vm1803_vm0, %v1802_v0 }
 0x437   : > { %v1046_v53 = vpop.permute.xlu1 %1045 }
 0x501   : > { %v880_v46 = vpop.f32.mrb[2].mxu1  ;;  %v1037_v47 = vpop.f32.mrb[4].mxu0 }
 0x502   : > { %v1505_v48 = vpop.f32.mrb[3].mxu1  ;;  %v1519_v49 = vpop.f32.mrb[5].mxu0 }
 0x505   : > { %v955_v50 = vpop.f32.mrb[4].mxu1 }
 0x506   : > { %v956_v51 = vadd.f32 %v955_v50, %v880_v46  ;;  %v1512_v52 = vpop.f32.mrb[5].mxu1 }
 0x508   : > { %v1041_v54 = vadd.f32 %v1037_v47, %v956_v51 }
 0x50a   : > { %v1048_v55 = vadd.f32 %v1046_v53, %v1041_v54 }
 0x50c   : > { %v1049_v56 = vmax.f32 %v1048_v55, 0.0 }
 0x50e   : > { %1051 = vrot.lane.b32.xlu0 %v1049_v56, %s1805_s14 }
 0x580   : > { %v1052_v57 = vpop.permute.xlu0 %1051 }
 0x581   : > { %1054 = vst.msk [vmem:[#allocation3] sm:$0xff] %vm793_vm11, %v1052_v57 }
 0x588   : > { %v1056_v58 = vld [vmem:[#allocation3] sm:$0xff] }
 0x589   : > { %1211 = vrot.lane.b32.xlu0 %v1056_v58, %s1807_s22  ;;  %1060 = vrot.lane.b32.xlu1 %v1056_v58, %s1808_s15 }
 0x58a   : > { %1526 = vmatpush3.msra.mxu0 %v1056_v58 }
 0x58b   : > { %1528 = vmatmul.mubr.msk.f32.vlgmr.msra.gmra.mrb[6].mxu0 %vm423_vm1, %v1055_v59 }
 0x58d   : > { %1291 = vperm.xlu1 %1632, %v1288_v60  }
 0x5fb   : > { %v1061_v62 = vpop.permute.xlu1 %1060  ;;  %v1212_v63 = vpop.permute.xlu0 %1211 }
 0x5fc   : > { %1521 = vmatpush3.msra.mxu1 %v1061_v62 }
 0x5fd   : > { %1523 = vmatmul.mubr.msk.f32.vlgmr.msra.gmra.mrb[6].mxu1 %vm423_vm1, %v1445_v61  ;;  %1530 = vmatprep.subr.mxu1 %v1802_v0 }
 0x5fe   : > { %1531 = vmatpush3.msra.mxu1 %v1212_v63  ;;  %1532 = vmatprep.mubr.msk.f32.mxu1 %vm1803_vm0, %v1802_v0  ;;  %vm1296_vm0 = vcmask 130048  }
 0x601   : > { %1533 = vmatmul.mubr.msk.f32.vlgmr.msra.gmra.mrb[8].mxu1 %vm423_vm1, %v1448_v1 }
 0x60c   : > { %v1292_v10 = vpop.permute.xlu1 %1291 }
 0x65e   : > { %v1205_v2 = vpop.f32.mrb[6].mxu0 }
 0x65f   : > { %v1529_v3 = vpop.f32.mrb[7].mxu0 }
 0x6d0   : > { %v1132_v4 = vpop.f32.mrb[6].mxu1 }
 0x6d1   : > { %v1206_v5 = vadd.f32 %v1205_v2, %v1132_v4  ;;  %v1524_v6 = vpop.f32.mrb[7].mxu1 }
 0x6d4   : > { %v1283_v7 = vpop.f32.mrb[8].mxu1 }
 0x6d5   : > { %v1287_v8 = vadd.f32 %v1283_v7, %v1206_v5  ;;  %v1534_v9 = vpop.f32.mrb[9].mxu1 }
 0x6d7   : > { %v1294_v0 = vadd.f32 %v1292_v10, %v1287_v8 }
 0x6d9   : > { %v1295_v11 = vmax.f32 %v1294_v0, 0.0 }
 0x6db   : > { %1297 = vst.msk [vmem:[%s371_s16] sm:$0xff] %vm1296_vm0, %v1295_v11 }
 0x6dc   : > { %1734 = shalt.err (!%p1731_p2)
}
 0x6dd   : > { %s1735_s29 = scalar_lea.hbm %s2130_s19, 128  ;;  %s1739_s14 = scalar_lea.hbm %s2182_s8, 256 }
 0x6de   : > { %p1736_p6 = scmp.ne.s32.totalorder %s2130_s19, %s1735_s29  ;;  %p1740_p12 = scmp.lt.u32.totalorder %s2130_s19, %s2182_s8 }
 0x6df   : > { %p1741_p11 = scmp.lt.u32.totalorder %s1739_s14, %s1735_s29  ;;  %p1743_p10 = scmp.lt.u32.totalorder %s1735_s29, %s2130_s19 }
 0x6e0   : > { %p1737_p8 = pnand %p1736_p6, %p2206_p13 }
 0x6e1   : > { %p1742_p0 = por %p1741_p11, %p1740_p12 }
 0x6e2   : > { %p1738_p4 = pneg %p1737_p8 }
 0x6e3   : > { %p1744_p3 = por %p1743_p10, %p1742_p0 }
 0x6e5   : > { %p1745_p7 = pnand %p1744_p3, %p1738_p4 }
 0x6e7   : > { %1748 = shalt.err (!%p1745_p7)
}
 0x6e8   : > { %1557 = dma.vmem_to_hbm [thread:$0]  (%p2206_p13), %s2132_s21, 128, %s2130_s19, %s1299_s0  }
 0x6e9 PF: > { %s1324_s15 = sand.u32 1, %s1783_s27   ;;  %p2207_p9 = scmp.ne.s32.totalorder %s2192_s12, 0 }
 0x6ea   : > { %p2208_p1 = scmp.ge.s32.totalorder %s1795_s30, 2  ;;  %s1325_s18 = scalar_lea.sflag [#allocation7], %s1324_s15 }
 0x6ec   : > { %p1571_p5 = pnand %p2208_p1, %p2207_p9 }
 0x6ee   : > { %1778 = dma.done.wait (!%p1571_p5), %s1325_s18, 128  }
 0x6ef   : > { %1780 = vsyncadd (!%p1571_p5), %s1325_s18, 4294967168  ;;  %s2209_s16 = sld [smem:[#allocation16_spill]]  ;;  %s2210_s29 = sld [smem:[#allocation17_spill]] }
 0x6f0   : > { %p24_p2 = scmp.ge.s32.totalorder %s1912_s17, 4   ;;  %s2211_s27 = smov %s1787_s28 }
 0x6f1   : > { %s2213_s30 = smov %s1912_s17 }
 0x6f2   :  { %26 = sbr.rel (!%p24_p2) target bundleno = 10 (0xa), region = 119 }
 0x6f5   : > { %s2212_s28 = smov %s2209_s16 }
 0x6f9   :  { %1330 = vsyncpa [#allocation6], 1 }
 0x6fa   :  { %1332 = vsyncpa [#allocation6 + $0x1], 1 }
 0x6fb   :  { %1333 = vsyncpa [#allocation9], 1 }
 0x6fc   :  { %1335 = vsyncpa [#allocation9 + $0x1], 1 }
 0x6fd   :  { %1336 = vsyncpa [#allocation7], 1 }
 0x6fe   :  { %1338 = vsyncpa [#allocation7 + $0x1], 1 }

</bundles_post_ra>
